<compile_context>
chip_gen: v7x
topology: tpu7x:2x2x1
jax: 0.10.0
libtpu: 0.0.40
codegen_flags: <defaults>
</compile_context>

<pallas_src>
import jax
import jax.numpy as jnp
from jax.experimental import pallas as pl
from jax.experimental.pallas import tpu as pltpu

C_OUT = 10                          # conv out channels
KSIZE = 3                           # conv kernel size
POOL = 3                            # maxpool window / stride
P_OUT = 2                           # pooled length (forced by view(-1, 10*2))
N_CLS = 2                           # linear output features
L_POS = POOL * P_OUT + KSIZE - 1    # = 8 padded sequence positions the kernel reads
LANE = 128                          # batch elements per lane row


def net_kernel(x_ref, wconv_ref, bconv_ref, wlin_ref, blin_ref, o_ref):
    """One batch tile (batch on lanes).

    x_ref    : (L_POS, SUB, LANE)   VMEM  padded input; x_ref[l] is a batch slab
    wconv_ref: (KSIZE*C_OUT,)       SMEM  wconv[k*C_OUT + c] = W_conv[c, 0, k]
    bconv_ref: (C_OUT,)             SMEM
    wlin_ref : (N_CLS*C_OUT*P_OUT,) SMEM  wlin[j*20 + c*2 + p] = W_lin[j, c*2 + p]
    blin_ref : (N_CLS,)             SMEM
    o_ref    : (N_CLS, SUB, LANE)   VMEM  transposed logits
    """
    sub, lane = x_ref.shape[1], x_ref.shape[2]

    # output accumulators: one (SUB, LANE) slab per class, seeded with the bias
    y = [jnp.zeros((sub, lane), jnp.float32) + blin_ref[j] for j in range(N_CLS)]

    for p in range(P_OUT):                          # pool windows (pooling fused)
        base = POOL * p
        # the 5 padded positions this window touches, each a (SUB, LANE) slab
        xw = [x_ref[base + i] for i in range(POOL + KSIZE - 1)]
        for c in range(C_OUT):                      # conv output channels
            w0 = wconv_ref[0 * C_OUT + c]
            w1 = wconv_ref[1 * C_OUT + c]
            w2 = wconv_ref[2 * C_OUT + c]
            bc = bconv_ref[c]
            pooled = None
            for q in range(POOL):                   # positions inside the window
                v = xw[q] * w0 + xw[q + 1] * w1 + xw[q + 2] * w2 + bc
                v = jnp.maximum(v, 0.0)             # ReLU
                pooled = v if pooled is None else jnp.maximum(pooled, v)
            # Linear(20 -> 2) as VPU scalar MACs; flat feature index = c*2 + p
            for j in range(N_CLS):
                y[j] = y[j] + pooled * wlin_ref[j * (C_OUT * P_OUT) + c * P_OUT + p]

    for j in range(N_CLS):
        o_ref[j] = y[j]


def net_forward(x, conv_w, conv_b, lin_w, lin_b):
    """x: (B, L) float32 with MaxPool1d(3) output length 2.  Returns (B, 2) float32."""
    B, L = x.shape
    assert (L - POOL) // POOL + 1 == P_OUT, "view(-1, 20) requires pooled length 2"

    # ---- batch tiling: batch goes on lanes; a tile is SUB sublane-rows x 128 lanes
    rows = -(-B // LANE)                       # number of 128-wide batch rows
    rows8 = ((rows + 7) // 8) * 8              # sublane granularity
    SUB = min(32, rows8)                       # <= 4096 samples / grid step
    rows_padded = ((rows8 + SUB - 1) // SUB) * SUB
    Bp = rows_padded * LANE
    grid = (rows_padded // SUB,)

    # ---- glue: pad batch, zero-pad sequence (conv padding=1), put batch on lanes
    xf = x.astype(jnp.float32)
    xp = jnp.pad(xf, ((0, Bp - B), (1, 1)))[:, :L_POS]            # (Bp, 8)
    xt = jnp.transpose(xp).reshape(L_POS, rows_padded, LANE)      # (8, rows_padded, 128)

    # ---- flatten the tiny parameters for SMEM scalar access
    wconv_flat = jnp.transpose(conv_w[:, 0, :], (1, 0)).reshape(-1).astype(jnp.float32)
    bconv_flat = conv_b.reshape(-1).astype(jnp.float32)
    wlin_flat = lin_w.reshape(-1).astype(jnp.float32)             # index j*20 + c*2 + p
    blin_flat = lin_b.reshape(-1).astype(jnp.float32)

    smem = pltpu.MemorySpace.SMEM
    out_t = pl.pallas_call(
        net_kernel,
        out_shape=jax.ShapeDtypeStruct((N_CLS, rows_padded, LANE), jnp.float32),
        grid=grid,
        in_specs=[
            pl.BlockSpec((L_POS, SUB, LANE), lambda i: (0, i, 0)),
            pl.BlockSpec(memory_space=smem),
            pl.BlockSpec(memory_space=smem),
            pl.BlockSpec(memory_space=smem),
            pl.BlockSpec(memory_space=smem),
        ],
        out_specs=pl.BlockSpec((N_CLS, SUB, LANE), lambda i: (0, i, 0)),
        compiler_params=pltpu.CompilerParams(dimension_semantics=("parallel",)),
    )(xt, wconv_flat, bconv_flat, wlin_flat, blin_flat)

    # (N_CLS, rows_padded, LANE) -> (Bp, N_CLS) -> (B, N_CLS)
    return jnp.transpose(out_t.reshape(N_CLS, Bp))[:B]


def ref_forward(x, conv_w, conv_b, lin_w, lin_b):
    """Pure-JAX reference mirroring the PyTorch forward exactly."""
    B, L = x.shape
    xp = jnp.pad(x, ((0, 0), (1, 1)))
    win = jnp.stack([xp[:, k:k + L] for k in range(KSIZE)], axis=-1)       # (B, L, K)
    conv = jnp.einsum('blk,ok->bol', win, conv_w[:, 0, :]) + conv_b[None, :, None]
    conv = jnp.maximum(conv, 0.0)                                          # (B, 10, L)
    pooled = conv.reshape(B, C_OUT, L // POOL, POOL).max(axis=-1)          # (B, 10, 2)
    flat = pooled.reshape(B, C_OUT * (L // POOL))                          # (B, 20)
    return flat @ lin_w.T + lin_b


if __name__ == "__main__":
    B, L = 300, 6   # L=6 -> MaxPool1d(3) gives length 2 -> view(-1, 20) is valid

    key = jax.random.PRNGKey(0)
    k1, k2, k3, k4, k5 = jax.random.split(key, 5)
    conv_w = jax.random.normal(k1, (C_OUT, 1, KSIZE), dtype=jnp.float32) * 0.1
    conv_b = jax.random.normal(k2, (C_OUT,), dtype=jnp.float32) * 0.1
    lin_w = jax.random.normal(k3, (N_CLS, C_OUT * P_OUT), dtype=jnp.float32) * 0.1
    lin_b = jax.random.normal(k4, (N_CLS,), dtype=jnp.float32) * 0.1
    x = jax.random.normal(k5, (B, L), dtype=jnp.float32)

    out = jax.block_until_ready(net_forward(x, conv_w, conv_b, lin_w, lin_b))
    ref = ref_forward(x, conv_w, conv_b, lin_w, lin_b)
    assert out.shape == (B, N_CLS)
    assert jnp.allclose(out, ref, atol=1e-5, rtol=1e-5), (out, ref)

    print("KERNEL_OK")
</pallas_src>

<mosaic_0001>
module attributes {stable_mosaic.version = 11 : i64} {
  func.func @net_kernel(%arg0: i32, %arg1: memref<8x8x128xf32, #tpu.memory_space<vmem>>, %arg2: memref<30xf32, #tpu.memory_space<smem>>, %arg3: memref<10xf32, #tpu.memory_space<smem>>, %arg4: memref<40xf32, #tpu.memory_space<smem>>, %arg5: memref<2xf32, #tpu.memory_space<smem>>, %arg6: memref<2x8x128xf32, #tpu.memory_space<vmem>>) attributes {dimension_semantics = [#tpu.dimension_semantics<parallel>], iteration_bounds = array<i64: 1>, scalar_prefetch = 0 : i64, scratch_operands = 0 : i64, tpu.core_type = #tpu.core_type<tc>, window_params = [{transform_indices = @transform_0, window_bounds = array<i64: 8, 8, 128>}, {transform_indices = @transform_1, window_bounds = array<i64: 30>}, {transform_indices = @transform_2, window_bounds = array<i64: 10>}, {transform_indices = @transform_3, window_bounds = array<i64: 40>}, {transform_indices = @transform_4, window_bounds = array<i64: 2>}, {transform_indices = @transform_5, window_bounds = array<i64: 2, 8, 128>}]} {
    %cst = arith.constant 0.000000e+00 : f32
    %0 = vector.broadcast %cst : f32 to vector<8x128xf32>
    %c0 = arith.constant 0 : index
    %1 = memref.load %arg5[%c0] : memref<2xf32, #tpu.memory_space<smem>>
    %2 = vector.broadcast %1 : f32 to vector<8x128xf32>
    %3 = arith.addf %0, %2 : vector<8x128xf32>
    %cst_0 = arith.constant 0.000000e+00 : f32
    %4 = vector.broadcast %cst_0 : f32 to vector<8x128xf32>
    %c1 = arith.constant 1 : index
    %5 = memref.load %arg5[%c1] : memref<2xf32, #tpu.memory_space<smem>>
    %6 = vector.broadcast %5 : f32 to vector<8x128xf32>
    %7 = arith.addf %4, %6 : vector<8x128xf32>
    %c0_1 = arith.constant 0 : index
    %c0_2 = arith.constant 0 : index
    %c0_3 = arith.constant 0 : index
    %8 = vector.load %arg1[%c0_1, %c0_2, %c0_3] : memref<8x8x128xf32, #tpu.memory_space<vmem>>, vector<1x8x128xf32>
    %9 = vector.shape_cast %8 : vector<1x8x128xf32> to vector<8x128xf32>
    %c1_4 = arith.constant 1 : index
    %c0_5 = arith.constant 0 : index
    %c0_6 = arith.constant 0 : index
    %10 = vector.load %arg1[%c1_4, %c0_5, %c0_6] : memref<8x8x128xf32, #tpu.memory_space<vmem>>, vector<1x8x128xf32>
    %11 = vector.shape_cast %10 : vector<1x8x128xf32> to vector<8x128xf32>
    %c2 = arith.constant 2 : index
    %c0_7 = arith.constant 0 : index
    %c0_8 = arith.constant 0 : index
    %12 = vector.load %arg1[%c2, %c0_7, %c0_8] : memref<8x8x128xf32, #tpu.memory_space<vmem>>, vector<1x8x128xf32>
    %13 = vector.shape_cast %12 : vector<1x8x128xf32> to vector<8x128xf32>
    %c3 = arith.constant 3 : index
    %c0_9 = arith.constant 0 : index
    %c0_10 = arith.constant 0 : index
    %14 = vector.load %arg1[%c3, %c0_9, %c0_10] : memref<8x8x128xf32, #tpu.memory_space<vmem>>, vector<1x8x128xf32>
    %15 = vector.shape_cast %14 : vector<1x8x128xf32> to vector<8x128xf32>
    %c4 = arith.constant 4 : index
    %c0_11 = arith.constant 0 : index
    %c0_12 = arith.constant 0 : index
    %16 = vector.load %arg1[%c4, %c0_11, %c0_12] : memref<8x8x128xf32, #tpu.memory_space<vmem>>, vector<1x8x128xf32>
    %17 = vector.shape_cast %16 : vector<1x8x128xf32> to vector<8x128xf32>
    %c0_13 = arith.constant 0 : index
    %18 = memref.load %arg2[%c0_13] : memref<30xf32, #tpu.memory_space<smem>>
    %c10 = arith.constant 10 : index
    %19 = memref.load %arg2[%c10] : memref<30xf32, #tpu.memory_space<smem>>
    %c20 = arith.constant 20 : index
    %20 = memref.load %arg2[%c20] : memref<30xf32, #tpu.memory_space<smem>>
    %c0_14 = arith.constant 0 : index
    %21 = memref.load %arg3[%c0_14] : memref<10xf32, #tpu.memory_space<smem>>
    %22 = vector.broadcast %18 : f32 to vector<8x128xf32>
    %23 = arith.mulf %9, %22 : vector<8x128xf32>
    %24 = vector.broadcast %19 : f32 to vector<8x128xf32>
    %25 = arith.mulf %11, %24 : vector<8x128xf32>
    %26 = arith.addf %23, %25 : vector<8x128xf32>
    %27 = vector.broadcast %20 : f32 to vector<8x128xf32>
    %28 = arith.mulf %13, %27 : vector<8x128xf32>
    %29 = arith.addf %26, %28 : vector<8x128xf32>
    %30 = vector.broadcast %21 : f32 to vector<8x128xf32>
    %31 = arith.addf %29, %30 : vector<8x128xf32>
    %cst_15 = arith.constant 0.000000e+00 : f32
    %32 = vector.broadcast %cst_15 : f32 to vector<8x128xf32>
    %33 = arith.maximumf %31, %32 : vector<8x128xf32>
    %34 = vector.broadcast %18 : f32 to vector<8x128xf32>
    %35 = arith.mulf %11, %34 : vector<8x128xf32>
    %36 = vector.broadcast %19 : f32 to vector<8x128xf32>
    %37 = arith.mulf %13, %36 : vector<8x128xf32>
    %38 = arith.addf %35, %37 : vector<8x128xf32>
    %39 = vector.broadcast %20 : f32 to vector<8x128xf32>
    %40 = arith.mulf %15, %39 : vector<8x128xf32>
    %41 = arith.addf %38, %40 : vector<8x128xf32>
    %42 = vector.broadcast %21 : f32 to vector<8x128xf32>
    %43 = arith.addf %41, %42 : vector<8x128xf32>
    %cst_16 = arith.constant 0.000000e+00 : f32
    %44 = vector.broadcast %cst_16 : f32 to vector<8x128xf32>
    %45 = arith.maximumf %43, %44 : vector<8x128xf32>
    %46 = arith.maximumf %33, %45 : vector<8x128xf32>
    %47 = vector.broadcast %18 : f32 to vector<8x128xf32>
    %48 = arith.mulf %13, %47 : vector<8x128xf32>
    %49 = vector.broadcast %19 : f32 to vector<8x128xf32>
    %50 = arith.mulf %15, %49 : vector<8x128xf32>
    %51 = arith.addf %48, %50 : vector<8x128xf32>
    %52 = vector.broadcast %20 : f32 to vector<8x128xf32>
    %53 = arith.mulf %17, %52 : vector<8x128xf32>
    %54 = arith.addf %51, %53 : vector<8x128xf32>
    %55 = vector.broadcast %21 : f32 to vector<8x128xf32>
    %56 = arith.addf %54, %55 : vector<8x128xf32>
    %cst_17 = arith.constant 0.000000e+00 : f32
    %57 = vector.broadcast %cst_17 : f32 to vector<8x128xf32>
    %58 = arith.maximumf %56, %57 : vector<8x128xf32>
    %59 = arith.maximumf %46, %58 : vector<8x128xf32>
    %c0_18 = arith.constant 0 : index
    %60 = memref.load %arg4[%c0_18] : memref<40xf32, #tpu.memory_space<smem>>
    %61 = vector.broadcast %60 : f32 to vector<8x128xf32>
    %62 = arith.mulf %59, %61 : vector<8x128xf32>
    %63 = arith.addf %3, %62 : vector<8x128xf32>
    %c20_19 = arith.constant 20 : index
    %64 = memref.load %arg4[%c20_19] : memref<40xf32, #tpu.memory_space<smem>>
    %65 = vector.broadcast %64 : f32 to vector<8x128xf32>
    %66 = arith.mulf %59, %65 : vector<8x128xf32>
    %67 = arith.addf %7, %66 : vector<8x128xf32>
    %c1_20 = arith.constant 1 : index
    %68 = memref.load %arg2[%c1_20] : memref<30xf32, #tpu.memory_space<smem>>
    %c11 = arith.constant 11 : index
    %69 = memref.load %arg2[%c11] : memref<30xf32, #tpu.memory_space<smem>>
    %c21 = arith.constant 21 : index
    %70 = memref.load %arg2[%c21] : memref<30xf32, #tpu.memory_space<smem>>
    %c1_21 = arith.constant 1 : index
    %71 = memref.load %arg3[%c1_21] : memref<10xf32, #tpu.memory_space<smem>>
    %72 = vector.broadcast %68 : f32 to vector<8x128xf32>
    %73 = arith.mulf %9, %72 : vector<8x128xf32>
    %74 = vector.broadcast %69 : f32 to vector<8x128xf32>
    %75 = arith.mulf %11, %74 : vector<8x128xf32>
    %76 = arith.addf %73, %75 : vector<8x128xf32>
    %77 = vector.broadcast %70 : f32 to vector<8x128xf32>
    %78 = arith.mulf %13, %77 : vector<8x128xf32>
    %79 = arith.addf %76, %78 : vector<8x128xf32>
    %80 = vector.broadcast %71 : f32 to vector<8x128xf32>
    %81 = arith.addf %79, %80 : vector<8x128xf32>
    %cst_22 = arith.constant 0.000000e+00 : f32
    %82 = vector.broadcast %cst_22 : f32 to vector<8x128xf32>
    %83 = arith.maximumf %81, %82 : vector<8x128xf32>
    %84 = vector.broadcast %68 : f32 to vector<8x128xf32>
    %85 = arith.mulf %11, %84 : vector<8x128xf32>
    %86 = vector.broadcast %69 : f32 to vector<8x128xf32>
    %87 = arith.mulf %13, %86 : vector<8x128xf32>
    %88 = arith.addf %85, %87 : vector<8x128xf32>
    %89 = vector.broadcast %70 : f32 to vector<8x128xf32>
    %90 = arith.mulf %15, %89 : vector<8x128xf32>
    %91 = arith.addf %88, %90 : vector<8x128xf32>
    %92 = vector.broadcast %71 : f32 to vector<8x128xf32>
    %93 = arith.addf %91, %92 : vector<8x128xf32>
    %cst_23 = arith.constant 0.000000e+00 : f32
    %94 = vector.broadcast %cst_23 : f32 to vector<8x128xf32>
    %95 = arith.maximumf %93, %94 : vector<8x128xf32>
    %96 = arith.maximumf %83, %95 : vector<8x128xf32>
    %97 = vector.broadcast %68 : f32 to vector<8x128xf32>
    %98 = arith.mulf %13, %97 : vector<8x128xf32>
    %99 = vector.broadcast %69 : f32 to vector<8x128xf32>
    %100 = arith.mulf %15, %99 : vector<8x128xf32>
    %101 = arith.addf %98, %100 : vector<8x128xf32>
    %102 = vector.broadcast %70 : f32 to vector<8x128xf32>
    %103 = arith.mulf %17, %102 : vector<8x128xf32>
    %104 = arith.addf %101, %103 : vector<8x128xf32>
    %105 = vector.broadcast %71 : f32 to vector<8x128xf32>
    %106 = arith.addf %104, %105 : vector<8x128xf32>
    %cst_24 = arith.constant 0.000000e+00 : f32
    %107 = vector.broadcast %cst_24 : f32 to vector<8x128xf32>
    %108 = arith.maximumf %106, %107 : vector<8x128xf32>
    %109 = arith.maximumf %96, %108 : vector<8x128xf32>
    %c2_25 = arith.constant 2 : index
    %110 = memref.load %arg4[%c2_25] : memref<40xf32, #tpu.memory_space<smem>>
    %111 = vector.broadcast %110 : f32 to vector<8x128xf32>
    %112 = arith.mulf %109, %111 : vector<8x128xf32>
    %113 = arith.addf %63, %112 : vector<8x128xf32>
    %c22 = arith.constant 22 : index
    %114 = memref.load %arg4[%c22] : memref<40xf32, #tpu.memory_space<smem>>
    %115 = vector.broadcast %114 : f32 to vector<8x128xf32>
    %116 = arith.mulf %109, %115 : vector<8x128xf32>
    %117 = arith.addf %67, %116 : vector<8x128xf32>
    %c2_26 = arith.constant 2 : index
    %118 = memref.load %arg2[%c2_26] : memref<30xf32, #tpu.memory_space<smem>>
    %c12 = arith.constant 12 : index
    %119 = memref.load %arg2[%c12] : memref<30xf32, #tpu.memory_space<smem>>
    %c22_27 = arith.constant 22 : index
    %120 = memref.load %arg2[%c22_27] : memref<30xf32, #tpu.memory_space<smem>>
    %c2_28 = arith.constant 2 : index
    %121 = memref.load %arg3[%c2_28] : memref<10xf32, #tpu.memory_space<smem>>
    %122 = vector.broadcast %118 : f32 to vector<8x128xf32>
    %123 = arith.mulf %9, %122 : vector<8x128xf32>
    %124 = vector.broadcast %119 : f32 to vector<8x128xf32>
    %125 = arith.mulf %11, %124 : vector<8x128xf32>
    %126 = arith.addf %123, %125 : vector<8x128xf32>
    %127 = vector.broadcast %120 : f32 to vector<8x128xf32>
    %128 = arith.mulf %13, %127 : vector<8x128xf32>
    %129 = arith.addf %126, %128 : vector<8x128xf32>
    %130 = vector.broadcast %121 : f32 to vector<8x128xf32>
    %131 = arith.addf %129, %130 : vector<8x128xf32>
    %cst_29 = arith.constant 0.000000e+00 : f32
    %132 = vector.broadcast %cst_29 : f32 to vector<8x128xf32>
    %133 = arith.maximumf %131, %132 : vector<8x128xf32>
    %134 = vector.broadcast %118 : f32 to vector<8x128xf32>
    %135 = arith.mulf %11, %134 : vector<8x128xf32>
    %136 = vector.broadcast %119 : f32 to vector<8x128xf32>
    %137 = arith.mulf %13, %136 : vector<8x128xf32>
    %138 = arith.addf %135, %137 : vector<8x128xf32>
    %139 = vector.broadcast %120 : f32 to vector<8x128xf32>
    %140 = arith.mulf %15, %139 : vector<8x128xf32>
    %141 = arith.addf %138, %140 : vector<8x128xf32>
    %142 = vector.broadcast %121 : f32 to vector<8x128xf32>
    %143 = arith.addf %141, %142 : vector<8x128xf32>
    %cst_30 = arith.constant 0.000000e+00 : f32
    %144 = vector.broadcast %cst_30 : f32 to vector<8x128xf32>
    %145 = arith.maximumf %143, %144 : vector<8x128xf32>
    %146 = arith.maximumf %133, %145 : vector<8x128xf32>
    %147 = vector.broadcast %118 : f32 to vector<8x128xf32>
    %148 = arith.mulf %13, %147 : vector<8x128xf32>
    %149 = vector.broadcast %119 : f32 to vector<8x128xf32>
    %150 = arith.mulf %15, %149 : vector<8x128xf32>
    %151 = arith.addf %148, %150 : vector<8x128xf32>
    %152 = vector.broadcast %120 : f32 to vector<8x128xf32>
    %153 = arith.mulf %17, %152 : vector<8x128xf32>
    %154 = arith.addf %151, %153 : vector<8x128xf32>
    %155 = vector.broadcast %121 : f32 to vector<8x128xf32>
    %156 = arith.addf %154, %155 : vector<8x128xf32>
    %cst_31 = arith.constant 0.000000e+00 : f32
    %157 = vector.broadcast %cst_31 : f32 to vector<8x128xf32>
    %158 = arith.maximumf %156, %157 : vector<8x128xf32>
    %159 = arith.maximumf %146, %158 : vector<8x128xf32>
    %c4_32 = arith.constant 4 : index
    %160 = memref.load %arg4[%c4_32] : memref<40xf32, #tpu.memory_space<smem>>
    %161 = vector.broadcast %160 : f32 to vector<8x128xf32>
    %162 = arith.mulf %159, %161 : vector<8x128xf32>
    %163 = arith.addf %113, %162 : vector<8x128xf32>
    %c24 = arith.constant 24 : index
    %164 = memref.load %arg4[%c24] : memref<40xf32, #tpu.memory_space<smem>>
    %165 = vector.broadcast %164 : f32 to vector<8x128xf32>
    %166 = arith.mulf %159, %165 : vector<8x128xf32>
    %167 = arith.addf %117, %166 : vector<8x128xf32>
    %c3_33 = arith.constant 3 : index
    %168 = memref.load %arg2[%c3_33] : memref<30xf32, #tpu.memory_space<smem>>
    %c13 = arith.constant 13 : index
    %169 = memref.load %arg2[%c13] : memref<30xf32, #tpu.memory_space<smem>>
    %c23 = arith.constant 23 : index
    %170 = memref.load %arg2[%c23] : memref<30xf32, #tpu.memory_space<smem>>
    %c3_34 = arith.constant 3 : index
    %171 = memref.load %arg3[%c3_34] : memref<10xf32, #tpu.memory_space<smem>>
    %172 = vector.broadcast %168 : f32 to vector<8x128xf32>
    %173 = arith.mulf %9, %172 : vector<8x128xf32>
    %174 = vector.broadcast %169 : f32 to vector<8x128xf32>
    %175 = arith.mulf %11, %174 : vector<8x128xf32>
    %176 = arith.addf %173, %175 : vector<8x128xf32>
    %177 = vector.broadcast %170 : f32 to vector<8x128xf32>
    %178 = arith.mulf %13, %177 : vector<8x128xf32>
    %179 = arith.addf %176, %178 : vector<8x128xf32>
    %180 = vector.broadcast %171 : f32 to vector<8x128xf32>
    %181 = arith.addf %179, %180 : vector<8x128xf32>
    %cst_35 = arith.constant 0.000000e+00 : f32
    %182 = vector.broadcast %cst_35 : f32 to vector<8x128xf32>
    %183 = arith.maximumf %181, %182 : vector<8x128xf32>
    %184 = vector.broadcast %168 : f32 to vector<8x128xf32>
    %185 = arith.mulf %11, %184 : vector<8x128xf32>
    %186 = vector.broadcast %169 : f32 to vector<8x128xf32>
    %187 = arith.mulf %13, %186 : vector<8x128xf32>
    %188 = arith.addf %185, %187 : vector<8x128xf32>
    %189 = vector.broadcast %170 : f32 to vector<8x128xf32>
    %190 = arith.mulf %15, %189 : vector<8x128xf32>
    %191 = arith.addf %188, %190 : vector<8x128xf32>
    %192 = vector.broadcast %171 : f32 to vector<8x128xf32>
    %193 = arith.addf %191, %192 : vector<8x128xf32>
    %cst_36 = arith.constant 0.000000e+00 : f32
    %194 = vector.broadcast %cst_36 : f32 to vector<8x128xf32>
    %195 = arith.maximumf %193, %194 : vector<8x128xf32>
    %196 = arith.maximumf %183, %195 : vector<8x128xf32>
    %197 = vector.broadcast %168 : f32 to vector<8x128xf32>
    %198 = arith.mulf %13, %197 : vector<8x128xf32>
    %199 = vector.broadcast %169 : f32 to vector<8x128xf32>
    %200 = arith.mulf %15, %199 : vector<8x128xf32>
    %201 = arith.addf %198, %200 : vector<8x128xf32>
    %202 = vector.broadcast %170 : f32 to vector<8x128xf32>
    %203 = arith.mulf %17, %202 : vector<8x128xf32>
    %204 = arith.addf %201, %203 : vector<8x128xf32>
    %205 = vector.broadcast %171 : f32 to vector<8x128xf32>
    %206 = arith.addf %204, %205 : vector<8x128xf32>
    %cst_37 = arith.constant 0.000000e+00 : f32
    %207 = vector.broadcast %cst_37 : f32 to vector<8x128xf32>
    %208 = arith.maximumf %206, %207 : vector<8x128xf32>
    %209 = arith.maximumf %196, %208 : vector<8x128xf32>
    %c6 = arith.constant 6 : index
    %210 = memref.load %arg4[%c6] : memref<40xf32, #tpu.memory_space<smem>>
    %211 = vector.broadcast %210 : f32 to vector<8x128xf32>
    %212 = arith.mulf %209, %211 : vector<8x128xf32>
    %213 = arith.addf %163, %212 : vector<8x128xf32>
    %c26 = arith.constant 26 : index
    %214 = memref.load %arg4[%c26] : memref<40xf32, #tpu.memory_space<smem>>
    %215 = vector.broadcast %214 : f32 to vector<8x128xf32>
    %216 = arith.mulf %209, %215 : vector<8x128xf32>
    %217 = arith.addf %167, %216 : vector<8x128xf32>
    %c4_38 = arith.constant 4 : index
    %218 = memref.load %arg2[%c4_38] : memref<30xf32, #tpu.memory_space<smem>>
    %c14 = arith.constant 14 : index
    %219 = memref.load %arg2[%c14] : memref<30xf32, #tpu.memory_space<smem>>
    %c24_39 = arith.constant 24 : index
    %220 = memref.load %arg2[%c24_39] : memref<30xf32, #tpu.memory_space<smem>>
    %c4_40 = arith.constant 4 : index
    %221 = memref.load %arg3[%c4_40] : memref<10xf32, #tpu.memory_space<smem>>
    %222 = vector.broadcast %218 : f32 to vector<8x128xf32>
    %223 = arith.mulf %9, %222 : vector<8x128xf32>
    %224 = vector.broadcast %219 : f32 to vector<8x128xf32>
    %225 = arith.mulf %11, %224 : vector<8x128xf32>
    %226 = arith.addf %223, %225 : vector<8x128xf32>
    %227 = vector.broadcast %220 : f32 to vector<8x128xf32>
    %228 = arith.mulf %13, %227 : vector<8x128xf32>
    %229 = arith.addf %226, %228 : vector<8x128xf32>
    %230 = vector.broadcast %221 : f32 to vector<8x128xf32>
    %231 = arith.addf %229, %230 : vector<8x128xf32>
    %cst_41 = arith.constant 0.000000e+00 : f32
    %232 = vector.broadcast %cst_41 : f32 to vector<8x128xf32>
    %233 = arith.maximumf %231, %232 : vector<8x128xf32>
    %234 = vector.broadcast %218 : f32 to vector<8x128xf32>
    %235 = arith.mulf %11, %234 : vector<8x128xf32>
    %236 = vector.broadcast %219 : f32 to vector<8x128xf32>
    %237 = arith.mulf %13, %236 : vector<8x128xf32>
    %238 = arith.addf %235, %237 : vector<8x128xf32>
    %239 = vector.broadcast %220 : f32 to vector<8x128xf32>
    %240 = arith.mulf %15, %239 : vector<8x128xf32>
    %241 = arith.addf %238, %240 : vector<8x128xf32>
    %242 = vector.broadcast %221 : f32 to vector<8x128xf32>
    %243 = arith.addf %241, %242 : vector<8x128xf32>
    %cst_42 = arith.constant 0.000000e+00 : f32
    %244 = vector.broadcast %cst_42 : f32 to vector<8x128xf32>
    %245 = arith.maximumf %243, %244 : vector<8x128xf32>
    %246 = arith.maximumf %233, %245 : vector<8x128xf32>
    %247 = vector.broadcast %218 : f32 to vector<8x128xf32>
    %248 = arith.mulf %13, %247 : vector<8x128xf32>
    %249 = vector.broadcast %219 : f32 to vector<8x128xf32>
    %250 = arith.mulf %15, %249 : vector<8x128xf32>
    %251 = arith.addf %248, %250 : vector<8x128xf32>
    %252 = vector.broadcast %220 : f32 to vector<8x128xf32>
    %253 = arith.mulf %17, %252 : vector<8x128xf32>
    %254 = arith.addf %251, %253 : vector<8x128xf32>
    %255 = vector.broadcast %221 : f32 to vector<8x128xf32>
    %256 = arith.addf %254, %255 : vector<8x128xf32>
    %cst_43 = arith.constant 0.000000e+00 : f32
    %257 = vector.broadcast %cst_43 : f32 to vector<8x128xf32>
    %258 = arith.maximumf %256, %257 : vector<8x128xf32>
    %259 = arith.maximumf %246, %258 : vector<8x128xf32>
    %c8 = arith.constant 8 : index
    %260 = memref.load %arg4[%c8] : memref<40xf32, #tpu.memory_space<smem>>
    %261 = vector.broadcast %260 : f32 to vector<8x128xf32>
    %262 = arith.mulf %259, %261 : vector<8x128xf32>
    %263 = arith.addf %213, %262 : vector<8x128xf32>
    %c28 = arith.constant 28 : index
    %264 = memref.load %arg4[%c28] : memref<40xf32, #tpu.memory_space<smem>>
    %265 = vector.broadcast %264 : f32 to vector<8x128xf32>
    %266 = arith.mulf %259, %265 : vector<8x128xf32>
    %267 = arith.addf %217, %266 : vector<8x128xf32>
    %c5 = arith.constant 5 : index
    %268 = memref.load %arg2[%c5] : memref<30xf32, #tpu.memory_space<smem>>
    %c15 = arith.constant 15 : index
    %269 = memref.load %arg2[%c15] : memref<30xf32, #tpu.memory_space<smem>>
    %c25 = arith.constant 25 : index
    %270 = memref.load %arg2[%c25] : memref<30xf32, #tpu.memory_space<smem>>
    %c5_44 = arith.constant 5 : index
    %271 = memref.load %arg3[%c5_44] : memref<10xf32, #tpu.memory_space<smem>>
    %272 = vector.broadcast %268 : f32 to vector<8x128xf32>
    %273 = arith.mulf %9, %272 : vector<8x128xf32>
    %274 = vector.broadcast %269 : f32 to vector<8x128xf32>
    %275 = arith.mulf %11, %274 : vector<8x128xf32>
    %276 = arith.addf %273, %275 : vector<8x128xf32>
    %277 = vector.broadcast %270 : f32 to vector<8x128xf32>
    %278 = arith.mulf %13, %277 : vector<8x128xf32>
    %279 = arith.addf %276, %278 : vector<8x128xf32>
    %280 = vector.broadcast %271 : f32 to vector<8x128xf32>
    %281 = arith.addf %279, %280 : vector<8x128xf32>
    %cst_45 = arith.constant 0.000000e+00 : f32
    %282 = vector.broadcast %cst_45 : f32 to vector<8x128xf32>
    %283 = arith.maximumf %281, %282 : vector<8x128xf32>
    %284 = vector.broadcast %268 : f32 to vector<8x128xf32>
    %285 = arith.mulf %11, %284 : vector<8x128xf32>
    %286 = vector.broadcast %269 : f32 to vector<8x128xf32>
    %287 = arith.mulf %13, %286 : vector<8x128xf32>
    %288 = arith.addf %285, %287 : vector<8x128xf32>
    %289 = vector.broadcast %270 : f32 to vector<8x128xf32>
    %290 = arith.mulf %15, %289 : vector<8x128xf32>
    %291 = arith.addf %288, %290 : vector<8x128xf32>
    %292 = vector.broadcast %271 : f32 to vector<8x128xf32>
    %293 = arith.addf %291, %292 : vector<8x128xf32>
    %cst_46 = arith.constant 0.000000e+00 : f32
    %294 = vector.broadcast %cst_46 : f32 to vector<8x128xf32>
    %295 = arith.maximumf %293, %294 : vector<8x128xf32>
    %296 = arith.maximumf %283, %295 : vector<8x128xf32>
    %297 = vector.broadcast %268 : f32 to vector<8x128xf32>
    %298 = arith.mulf %13, %297 : vector<8x128xf32>
    %299 = vector.broadcast %269 : f32 to vector<8x128xf32>
    %300 = arith.mulf %15, %299 : vector<8x128xf32>
    %301 = arith.addf %298, %300 : vector<8x128xf32>
    %302 = vector.broadcast %270 : f32 to vector<8x128xf32>
    %303 = arith.mulf %17, %302 : vector<8x128xf32>
    %304 = arith.addf %301, %303 : vector<8x128xf32>
    %305 = vector.broadcast %271 : f32 to vector<8x128xf32>
    %306 = arith.addf %304, %305 : vector<8x128xf32>
    %cst_47 = arith.constant 0.000000e+00 : f32
    %307 = vector.broadcast %cst_47 : f32 to vector<8x128xf32>
    %308 = arith.maximumf %306, %307 : vector<8x128xf32>
    %309 = arith.maximumf %296, %308 : vector<8x128xf32>
    %c10_48 = arith.constant 10 : index
    %310 = memref.load %arg4[%c10_48] : memref<40xf32, #tpu.memory_space<smem>>
    %311 = vector.broadcast %310 : f32 to vector<8x128xf32>
    %312 = arith.mulf %309, %311 : vector<8x128xf32>
    %313 = arith.addf %263, %312 : vector<8x128xf32>
    %c30 = arith.constant 30 : index
    %314 = memref.load %arg4[%c30] : memref<40xf32, #tpu.memory_space<smem>>
    %315 = vector.broadcast %314 : f32 to vector<8x128xf32>
    %316 = arith.mulf %309, %315 : vector<8x128xf32>
    %317 = arith.addf %267, %316 : vector<8x128xf32>
    %c6_49 = arith.constant 6 : index
    %318 = memref.load %arg2[%c6_49] : memref<30xf32, #tpu.memory_space<smem>>
    %c16 = arith.constant 16 : index
    %319 = memref.load %arg2[%c16] : memref<30xf32, #tpu.memory_space<smem>>
    %c26_50 = arith.constant 26 : index
    %320 = memref.load %arg2[%c26_50] : memref<30xf32, #tpu.memory_space<smem>>
    %c6_51 = arith.constant 6 : index
    %321 = memref.load %arg3[%c6_51] : memref<10xf32, #tpu.memory_space<smem>>
    %322 = vector.broadcast %318 : f32 to vector<8x128xf32>
    %323 = arith.mulf %9, %322 : vector<8x128xf32>
    %324 = vector.broadcast %319 : f32 to vector<8x128xf32>
    %325 = arith.mulf %11, %324 : vector<8x128xf32>
    %326 = arith.addf %323, %325 : vector<8x128xf32>
    %327 = vector.broadcast %320 : f32 to vector<8x128xf32>
    %328 = arith.mulf %13, %327 : vector<8x128xf32>
    %329 = arith.addf %326, %328 : vector<8x128xf32>
    %330 = vector.broadcast %321 : f32 to vector<8x128xf32>
    %331 = arith.addf %329, %330 : vector<8x128xf32>
    %cst_52 = arith.constant 0.000000e+00 : f32
    %332 = vector.broadcast %cst_52 : f32 to vector<8x128xf32>
    %333 = arith.maximumf %331, %332 : vector<8x128xf32>
    %334 = vector.broadcast %318 : f32 to vector<8x128xf32>
    %335 = arith.mulf %11, %334 : vector<8x128xf32>
    %336 = vector.broadcast %319 : f32 to vector<8x128xf32>
    %337 = arith.mulf %13, %336 : vector<8x128xf32>
    %338 = arith.addf %335, %337 : vector<8x128xf32>
    %339 = vector.broadcast %320 : f32 to vector<8x128xf32>
    %340 = arith.mulf %15, %339 : vector<8x128xf32>
    %341 = arith.addf %338, %340 : vector<8x128xf32>
    %342 = vector.broadcast %321 : f32 to vector<8x128xf32>
    %343 = arith.addf %341, %342 : vector<8x128xf32>
    %cst_53 = arith.constant 0.000000e+00 : f32
    %344 = vector.broadcast %cst_53 : f32 to vector<8x128xf32>
    %345 = arith.maximumf %343, %344 : vector<8x128xf32>
    %346 = arith.maximumf %333, %345 : vector<8x128xf32>
    %347 = vector.broadcast %318 : f32 to vector<8x128xf32>
    %348 = arith.mulf %13, %347 : vector<8x128xf32>
    %349 = vector.broadcast %319 : f32 to vector<8x128xf32>
    %350 = arith.mulf %15, %349 : vector<8x128xf32>
    %351 = arith.addf %348, %350 : vector<8x128xf32>
    %352 = vector.broadcast %320 : f32 to vector<8x128xf32>
    %353 = arith.mulf %17, %352 : vector<8x128xf32>
    %354 = arith.addf %351, %353 : vector<8x128xf32>
    %355 = vector.broadcast %321 : f32 to vector<8x128xf32>
    %356 = arith.addf %354, %355 : vector<8x128xf32>
    %cst_54 = arith.constant 0.000000e+00 : f32
    %357 = vector.broadcast %cst_54 : f32 to vector<8x128xf32>
    %358 = arith.maximumf %356, %357 : vector<8x128xf32>
    %359 = arith.maximumf %346, %358 : vector<8x128xf32>
    %c12_55 = arith.constant 12 : index
    %360 = memref.load %arg4[%c12_55] : memref<40xf32, #tpu.memory_space<smem>>
    %361 = vector.broadcast %360 : f32 to vector<8x128xf32>
    %362 = arith.mulf %359, %361 : vector<8x128xf32>
    %363 = arith.addf %313, %362 : vector<8x128xf32>
    %c32 = arith.constant 32 : index
    %364 = memref.load %arg4[%c32] : memref<40xf32, #tpu.memory_space<smem>>
    %365 = vector.broadcast %364 : f32 to vector<8x128xf32>
    %366 = arith.mulf %359, %365 : vector<8x128xf32>
    %367 = arith.addf %317, %366 : vector<8x128xf32>
    %c7 = arith.constant 7 : index
    %368 = memref.load %arg2[%c7] : memref<30xf32, #tpu.memory_space<smem>>
    %c17 = arith.constant 17 : index
    %369 = memref.load %arg2[%c17] : memref<30xf32, #tpu.memory_space<smem>>
    %c27 = arith.constant 27 : index
    %370 = memref.load %arg2[%c27] : memref<30xf32, #tpu.memory_space<smem>>
    %c7_56 = arith.constant 7 : index
    %371 = memref.load %arg3[%c7_56] : memref<10xf32, #tpu.memory_space<smem>>
    %372 = vector.broadcast %368 : f32 to vector<8x128xf32>
    %373 = arith.mulf %9, %372 : vector<8x128xf32>
    %374 = vector.broadcast %369 : f32 to vector<8x128xf32>
    %375 = arith.mulf %11, %374 : vector<8x128xf32>
    %376 = arith.addf %373, %375 : vector<8x128xf32>
    %377 = vector.broadcast %370 : f32 to vector<8x128xf32>
    %378 = arith.mulf %13, %377 : vector<8x128xf32>
    %379 = arith.addf %376, %378 : vector<8x128xf32>
    %380 = vector.broadcast %371 : f32 to vector<8x128xf32>
    %381 = arith.addf %379, %380 : vector<8x128xf32>
    %cst_57 = arith.constant 0.000000e+00 : f32
    %382 = vector.broadcast %cst_57 : f32 to vector<8x128xf32>
    %383 = arith.maximumf %381, %382 : vector<8x128xf32>
    %384 = vector.broadcast %368 : f32 to vector<8x128xf32>
    %385 = arith.mulf %11, %384 : vector<8x128xf32>
    %386 = vector.broadcast %369 : f32 to vector<8x128xf32>
    %387 = arith.mulf %13, %386 : vector<8x128xf32>
    %388 = arith.addf %385, %387 : vector<8x128xf32>
    %389 = vector.broadcast %370 : f32 to vector<8x128xf32>
    %390 = arith.mulf %15, %389 : vector<8x128xf32>
    %391 = arith.addf %388, %390 : vector<8x128xf32>
    %392 = vector.broadcast %371 : f32 to vector<8x128xf32>
    %393 = arith.addf %391, %392 : vector<8x128xf32>
    %cst_58 = arith.constant 0.000000e+00 : f32
    %394 = vector.broadcast %cst_58 : f32 to vector<8x128xf32>
    %395 = arith.maximumf %393, %394 : vector<8x128xf32>
    %396 = arith.maximumf %383, %395 : vector<8x128xf32>
    %397 = vector.broadcast %368 : f32 to vector<8x128xf32>
    %398 = arith.mulf %13, %397 : vector<8x128xf32>
    %399 = vector.broadcast %369 : f32 to vector<8x128xf32>
    %400 = arith.mulf %15, %399 : vector<8x128xf32>
    %401 = arith.addf %398, %400 : vector<8x128xf32>
    %402 = vector.broadcast %370 : f32 to vector<8x128xf32>
    %403 = arith.mulf %17, %402 : vector<8x128xf32>
    %404 = arith.addf %401, %403 : vector<8x128xf32>
    %405 = vector.broadcast %371 : f32 to vector<8x128xf32>
    %406 = arith.addf %404, %405 : vector<8x128xf32>
    %cst_59 = arith.constant 0.000000e+00 : f32
    %407 = vector.broadcast %cst_59 : f32 to vector<8x128xf32>
    %408 = arith.maximumf %406, %407 : vector<8x128xf32>
    %409 = arith.maximumf %396, %408 : vector<8x128xf32>
    %c14_60 = arith.constant 14 : index
    %410 = memref.load %arg4[%c14_60] : memref<40xf32, #tpu.memory_space<smem>>
    %411 = vector.broadcast %410 : f32 to vector<8x128xf32>
    %412 = arith.mulf %409, %411 : vector<8x128xf32>
    %413 = arith.addf %363, %412 : vector<8x128xf32>
    %c34 = arith.constant 34 : index
    %414 = memref.load %arg4[%c34] : memref<40xf32, #tpu.memory_space<smem>>
    %415 = vector.broadcast %414 : f32 to vector<8x128xf32>
    %416 = arith.mulf %409, %415 : vector<8x128xf32>
    %417 = arith.addf %367, %416 : vector<8x128xf32>
    %c8_61 = arith.constant 8 : index
    %418 = memref.load %arg2[%c8_61] : memref<30xf32, #tpu.memory_space<smem>>
    %c18 = arith.constant 18 : index
    %419 = memref.load %arg2[%c18] : memref<30xf32, #tpu.memory_space<smem>>
    %c28_62 = arith.constant 28 : index
    %420 = memref.load %arg2[%c28_62] : memref<30xf32, #tpu.memory_space<smem>>
    %c8_63 = arith.constant 8 : index
    %421 = memref.load %arg3[%c8_63] : memref<10xf32, #tpu.memory_space<smem>>
    %422 = vector.broadcast %418 : f32 to vector<8x128xf32>
    %423 = arith.mulf %9, %422 : vector<8x128xf32>
    %424 = vector.broadcast %419 : f32 to vector<8x128xf32>
    %425 = arith.mulf %11, %424 : vector<8x128xf32>
    %426 = arith.addf %423, %425 : vector<8x128xf32>
    %427 = vector.broadcast %420 : f32 to vector<8x128xf32>
    %428 = arith.mulf %13, %427 : vector<8x128xf32>
    %429 = arith.addf %426, %428 : vector<8x128xf32>
    %430 = vector.broadcast %421 : f32 to vector<8x128xf32>
    %431 = arith.addf %429, %430 : vector<8x128xf32>
    %cst_64 = arith.constant 0.000000e+00 : f32
    %432 = vector.broadcast %cst_64 : f32 to vector<8x128xf32>
    %433 = arith.maximumf %431, %432 : vector<8x128xf32>
    %434 = vector.broadcast %418 : f32 to vector<8x128xf32>
    %435 = arith.mulf %11, %434 : vector<8x128xf32>
    %436 = vector.broadcast %419 : f32 to vector<8x128xf32>
    %437 = arith.mulf %13, %436 : vector<8x128xf32>
    %438 = arith.addf %435, %437 : vector<8x128xf32>
    %439 = vector.broadcast %420 : f32 to vector<8x128xf32>
    %440 = arith.mulf %15, %439 : vector<8x128xf32>
    %441 = arith.addf %438, %440 : vector<8x128xf32>
    %442 = vector.broadcast %421 : f32 to vector<8x128xf32>
    %443 = arith.addf %441, %442 : vector<8x128xf32>
    %cst_65 = arith.constant 0.000000e+00 : f32
    %444 = vector.broadcast %cst_65 : f32 to vector<8x128xf32>
    %445 = arith.maximumf %443, %444 : vector<8x128xf32>
    %446 = arith.maximumf %433, %445 : vector<8x128xf32>
    %447 = vector.broadcast %418 : f32 to vector<8x128xf32>
    %448 = arith.mulf %13, %447 : vector<8x128xf32>
    %449 = vector.broadcast %419 : f32 to vector<8x128xf32>
    %450 = arith.mulf %15, %449 : vector<8x128xf32>
    %451 = arith.addf %448, %450 : vector<8x128xf32>
    %452 = vector.broadcast %420 : f32 to vector<8x128xf32>
    %453 = arith.mulf %17, %452 : vector<8x128xf32>
    %454 = arith.addf %451, %453 : vector<8x128xf32>
    %455 = vector.broadcast %421 : f32 to vector<8x128xf32>
    %456 = arith.addf %454, %455 : vector<8x128xf32>
    %cst_66 = arith.constant 0.000000e+00 : f32
    %457 = vector.broadcast %cst_66 : f32 to vector<8x128xf32>
    %458 = arith.maximumf %456, %457 : vector<8x128xf32>
    %459 = arith.maximumf %446, %458 : vector<8x128xf32>
    %c16_67 = arith.constant 16 : index
    %460 = memref.load %arg4[%c16_67] : memref<40xf32, #tpu.memory_space<smem>>
    %461 = vector.broadcast %460 : f32 to vector<8x128xf32>
    %462 = arith.mulf %459, %461 : vector<8x128xf32>
    %463 = arith.addf %413, %462 : vector<8x128xf32>
    %c36 = arith.constant 36 : index
    %464 = memref.load %arg4[%c36] : memref<40xf32, #tpu.memory_space<smem>>
    %465 = vector.broadcast %464 : f32 to vector<8x128xf32>
    %466 = arith.mulf %459, %465 : vector<8x128xf32>
    %467 = arith.addf %417, %466 : vector<8x128xf32>
    %c9 = arith.constant 9 : index
    %468 = memref.load %arg2[%c9] : memref<30xf32, #tpu.memory_space<smem>>
    %c19 = arith.constant 19 : index
    %469 = memref.load %arg2[%c19] : memref<30xf32, #tpu.memory_space<smem>>
    %c29 = arith.constant 29 : index
    %470 = memref.load %arg2[%c29] : memref<30xf32, #tpu.memory_space<smem>>
    %c9_68 = arith.constant 9 : index
    %471 = memref.load %arg3[%c9_68] : memref<10xf32, #tpu.memory_space<smem>>
    %472 = vector.broadcast %468 : f32 to vector<8x128xf32>
    %473 = arith.mulf %9, %472 : vector<8x128xf32>
    %474 = vector.broadcast %469 : f32 to vector<8x128xf32>
    %475 = arith.mulf %11, %474 : vector<8x128xf32>
    %476 = arith.addf %473, %475 : vector<8x128xf32>
    %477 = vector.broadcast %470 : f32 to vector<8x128xf32>
    %478 = arith.mulf %13, %477 : vector<8x128xf32>
    %479 = arith.addf %476, %478 : vector<8x128xf32>
    %480 = vector.broadcast %471 : f32 to vector<8x128xf32>
    %481 = arith.addf %479, %480 : vector<8x128xf32>
    %cst_69 = arith.constant 0.000000e+00 : f32
    %482 = vector.broadcast %cst_69 : f32 to vector<8x128xf32>
    %483 = arith.maximumf %481, %482 : vector<8x128xf32>
    %484 = vector.broadcast %468 : f32 to vector<8x128xf32>
    %485 = arith.mulf %11, %484 : vector<8x128xf32>
    %486 = vector.broadcast %469 : f32 to vector<8x128xf32>
    %487 = arith.mulf %13, %486 : vector<8x128xf32>
    %488 = arith.addf %485, %487 : vector<8x128xf32>
    %489 = vector.broadcast %470 : f32 to vector<8x128xf32>
    %490 = arith.mulf %15, %489 : vector<8x128xf32>
    %491 = arith.addf %488, %490 : vector<8x128xf32>
    %492 = vector.broadcast %471 : f32 to vector<8x128xf32>
    %493 = arith.addf %491, %492 : vector<8x128xf32>
    %cst_70 = arith.constant 0.000000e+00 : f32
    %494 = vector.broadcast %cst_70 : f32 to vector<8x128xf32>
    %495 = arith.maximumf %493, %494 : vector<8x128xf32>
    %496 = arith.maximumf %483, %495 : vector<8x128xf32>
    %497 = vector.broadcast %468 : f32 to vector<8x128xf32>
    %498 = arith.mulf %13, %497 : vector<8x128xf32>
    %499 = vector.broadcast %469 : f32 to vector<8x128xf32>
    %500 = arith.mulf %15, %499 : vector<8x128xf32>
    %501 = arith.addf %498, %500 : vector<8x128xf32>
    %502 = vector.broadcast %470 : f32 to vector<8x128xf32>
    %503 = arith.mulf %17, %502 : vector<8x128xf32>
    %504 = arith.addf %501, %503 : vector<8x128xf32>
    %505 = vector.broadcast %471 : f32 to vector<8x128xf32>
    %506 = arith.addf %504, %505 : vector<8x128xf32>
    %cst_71 = arith.constant 0.000000e+00 : f32
    %507 = vector.broadcast %cst_71 : f32 to vector<8x128xf32>
    %508 = arith.maximumf %506, %507 : vector<8x128xf32>
    %509 = arith.maximumf %496, %508 : vector<8x128xf32>
    %c18_72 = arith.constant 18 : index
    %510 = memref.load %arg4[%c18_72] : memref<40xf32, #tpu.memory_space<smem>>
    %511 = vector.broadcast %510 : f32 to vector<8x128xf32>
    %512 = arith.mulf %509, %511 : vector<8x128xf32>
    %513 = arith.addf %463, %512 : vector<8x128xf32>
    %c38 = arith.constant 38 : index
    %514 = memref.load %arg4[%c38] : memref<40xf32, #tpu.memory_space<smem>>
    %515 = vector.broadcast %514 : f32 to vector<8x128xf32>
    %516 = arith.mulf %509, %515 : vector<8x128xf32>
    %517 = arith.addf %467, %516 : vector<8x128xf32>
    %c3_73 = arith.constant 3 : index
    %c0_74 = arith.constant 0 : index
    %c0_75 = arith.constant 0 : index
    %518 = vector.load %arg1[%c3_73, %c0_74, %c0_75] : memref<8x8x128xf32, #tpu.memory_space<vmem>>, vector<1x8x128xf32>
    %519 = vector.shape_cast %518 : vector<1x8x128xf32> to vector<8x128xf32>
    %c4_76 = arith.constant 4 : index
    %c0_77 = arith.constant 0 : index
    %c0_78 = arith.constant 0 : index
    %520 = vector.load %arg1[%c4_76, %c0_77, %c0_78] : memref<8x8x128xf32, #tpu.memory_space<vmem>>, vector<1x8x128xf32>
    %521 = vector.shape_cast %520 : vector<1x8x128xf32> to vector<8x128xf32>
    %c5_79 = arith.constant 5 : index
    %c0_80 = arith.constant 0 : index
    %c0_81 = arith.constant 0 : index
    %522 = vector.load %arg1[%c5_79, %c0_80, %c0_81] : memref<8x8x128xf32, #tpu.memory_space<vmem>>, vector<1x8x128xf32>
    %523 = vector.shape_cast %522 : vector<1x8x128xf32> to vector<8x128xf32>
    %c6_82 = arith.constant 6 : index
    %c0_83 = arith.constant 0 : index
    %c0_84 = arith.constant 0 : index
    %524 = vector.load %arg1[%c6_82, %c0_83, %c0_84] : memref<8x8x128xf32, #tpu.memory_space<vmem>>, vector<1x8x128xf32>
    %525 = vector.shape_cast %524 : vector<1x8x128xf32> to vector<8x128xf32>
    %c7_85 = arith.constant 7 : index
    %c0_86 = arith.constant 0 : index
    %c0_87 = arith.constant 0 : index
    %526 = vector.load %arg1[%c7_85, %c0_86, %c0_87] : memref<8x8x128xf32, #tpu.memory_space<vmem>>, vector<1x8x128xf32>
    %527 = vector.shape_cast %526 : vector<1x8x128xf32> to vector<8x128xf32>
    %c0_88 = arith.constant 0 : index
    %528 = memref.load %arg2[%c0_88] : memref<30xf32, #tpu.memory_space<smem>>
    %c10_89 = arith.constant 10 : index
    %529 = memref.load %arg2[%c10_89] : memref<30xf32, #tpu.memory_space<smem>>
    %c20_90 = arith.constant 20 : index
    %530 = memref.load %arg2[%c20_90] : memref<30xf32, #tpu.memory_space<smem>>
    %c0_91 = arith.constant 0 : index
    %531 = memref.load %arg3[%c0_91] : memref<10xf32, #tpu.memory_space<smem>>
    %532 = vector.broadcast %528 : f32 to vector<8x128xf32>
    %533 = arith.mulf %519, %532 : vector<8x128xf32>
    %534 = vector.broadcast %529 : f32 to vector<8x128xf32>
    %535 = arith.mulf %521, %534 : vector<8x128xf32>
    %536 = arith.addf %533, %535 : vector<8x128xf32>
    %537 = vector.broadcast %530 : f32 to vector<8x128xf32>
    %538 = arith.mulf %523, %537 : vector<8x128xf32>
    %539 = arith.addf %536, %538 : vector<8x128xf32>
    %540 = vector.broadcast %531 : f32 to vector<8x128xf32>
    %541 = arith.addf %539, %540 : vector<8x128xf32>
    %cst_92 = arith.constant 0.000000e+00 : f32
    %542 = vector.broadcast %cst_92 : f32 to vector<8x128xf32>
    %543 = arith.maximumf %541, %542 : vector<8x128xf32>
    %544 = vector.broadcast %528 : f32 to vector<8x128xf32>
    %545 = arith.mulf %521, %544 : vector<8x128xf32>
    %546 = vector.broadcast %529 : f32 to vector<8x128xf32>
    %547 = arith.mulf %523, %546 : vector<8x128xf32>
    %548 = arith.addf %545, %547 : vector<8x128xf32>
    %549 = vector.broadcast %530 : f32 to vector<8x128xf32>
    %550 = arith.mulf %525, %549 : vector<8x128xf32>
    %551 = arith.addf %548, %550 : vector<8x128xf32>
    %552 = vector.broadcast %531 : f32 to vector<8x128xf32>
    %553 = arith.addf %551, %552 : vector<8x128xf32>
    %cst_93 = arith.constant 0.000000e+00 : f32
    %554 = vector.broadcast %cst_93 : f32 to vector<8x128xf32>
    %555 = arith.maximumf %553, %554 : vector<8x128xf32>
    %556 = arith.maximumf %543, %555 : vector<8x128xf32>
    %557 = vector.broadcast %528 : f32 to vector<8x128xf32>
    %558 = arith.mulf %523, %557 : vector<8x128xf32>
    %559 = vector.broadcast %529 : f32 to vector<8x128xf32>
    %560 = arith.mulf %525, %559 : vector<8x128xf32>
    %561 = arith.addf %558, %560 : vector<8x128xf32>
    %562 = vector.broadcast %530 : f32 to vector<8x128xf32>
    %563 = arith.mulf %527, %562 : vector<8x128xf32>
    %564 = arith.addf %561, %563 : vector<8x128xf32>
    %565 = vector.broadcast %531 : f32 to vector<8x128xf32>
    %566 = arith.addf %564, %565 : vector<8x128xf32>
    %cst_94 = arith.constant 0.000000e+00 : f32
    %567 = vector.broadcast %cst_94 : f32 to vector<8x128xf32>
    %568 = arith.maximumf %566, %567 : vector<8x128xf32>
    %569 = arith.maximumf %556, %568 : vector<8x128xf32>
    %c1_95 = arith.constant 1 : index
    %570 = memref.load %arg4[%c1_95] : memref<40xf32, #tpu.memory_space<smem>>
    %571 = vector.broadcast %570 : f32 to vector<8x128xf32>
    %572 = arith.mulf %569, %571 : vector<8x128xf32>
    %573 = arith.addf %513, %572 : vector<8x128xf32>
    %c21_96 = arith.constant 21 : index
    %574 = memref.load %arg4[%c21_96] : memref<40xf32, #tpu.memory_space<smem>>
    %575 = vector.broadcast %574 : f32 to vector<8x128xf32>
    %576 = arith.mulf %569, %575 : vector<8x128xf32>
    %577 = arith.addf %517, %576 : vector<8x128xf32>
    %c1_97 = arith.constant 1 : index
    %578 = memref.load %arg2[%c1_97] : memref<30xf32, #tpu.memory_space<smem>>
    %c11_98 = arith.constant 11 : index
    %579 = memref.load %arg2[%c11_98] : memref<30xf32, #tpu.memory_space<smem>>
    %c21_99 = arith.constant 21 : index
    %580 = memref.load %arg2[%c21_99] : memref<30xf32, #tpu.memory_space<smem>>
    %c1_100 = arith.constant 1 : index
    %581 = memref.load %arg3[%c1_100] : memref<10xf32, #tpu.memory_space<smem>>
    %582 = vector.broadcast %578 : f32 to vector<8x128xf32>
    %583 = arith.mulf %519, %582 : vector<8x128xf32>
    %584 = vector.broadcast %579 : f32 to vector<8x128xf32>
    %585 = arith.mulf %521, %584 : vector<8x128xf32>
    %586 = arith.addf %583, %585 : vector<8x128xf32>
    %587 = vector.broadcast %580 : f32 to vector<8x128xf32>
    %588 = arith.mulf %523, %587 : vector<8x128xf32>
    %589 = arith.addf %586, %588 : vector<8x128xf32>
    %590 = vector.broadcast %581 : f32 to vector<8x128xf32>
    %591 = arith.addf %589, %590 : vector<8x128xf32>
    %cst_101 = arith.constant 0.000000e+00 : f32
    %592 = vector.broadcast %cst_101 : f32 to vector<8x128xf32>
    %593 = arith.maximumf %591, %592 : vector<8x128xf32>
    %594 = vector.broadcast %578 : f32 to vector<8x128xf32>
    %595 = arith.mulf %521, %594 : vector<8x128xf32>
    %596 = vector.broadcast %579 : f32 to vector<8x128xf32>
    %597 = arith.mulf %523, %596 : vector<8x128xf32>
    %598 = arith.addf %595, %597 : vector<8x128xf32>
    %599 = vector.broadcast %580 : f32 to vector<8x128xf32>
    %600 = arith.mulf %525, %599 : vector<8x128xf32>
    %601 = arith.addf %598, %600 : vector<8x128xf32>
    %602 = vector.broadcast %581 : f32 to vector<8x128xf32>
    %603 = arith.addf %601, %602 : vector<8x128xf32>
    %cst_102 = arith.constant 0.000000e+00 : f32
    %604 = vector.broadcast %cst_102 : f32 to vector<8x128xf32>
    %605 = arith.maximumf %603, %604 : vector<8x128xf32>
    %606 = arith.maximumf %593, %605 : vector<8x128xf32>
    %607 = vector.broadcast %578 : f32 to vector<8x128xf32>
    %608 = arith.mulf %523, %607 : vector<8x128xf32>
    %609 = vector.broadcast %579 : f32 to vector<8x128xf32>
    %610 = arith.mulf %525, %609 : vector<8x128xf32>
    %611 = arith.addf %608, %610 : vector<8x128xf32>
    %612 = vector.broadcast %580 : f32 to vector<8x128xf32>
    %613 = arith.mulf %527, %612 : vector<8x128xf32>
    %614 = arith.addf %611, %613 : vector<8x128xf32>
    %615 = vector.broadcast %581 : f32 to vector<8x128xf32>
    %616 = arith.addf %614, %615 : vector<8x128xf32>
    %cst_103 = arith.constant 0.000000e+00 : f32
    %617 = vector.broadcast %cst_103 : f32 to vector<8x128xf32>
    %618 = arith.maximumf %616, %617 : vector<8x128xf32>
    %619 = arith.maximumf %606, %618 : vector<8x128xf32>
    %c3_104 = arith.constant 3 : index
    %620 = memref.load %arg4[%c3_104] : memref<40xf32, #tpu.memory_space<smem>>
    %621 = vector.broadcast %620 : f32 to vector<8x128xf32>
    %622 = arith.mulf %619, %621 : vector<8x128xf32>
    %623 = arith.addf %573, %622 : vector<8x128xf32>
    %c23_105 = arith.constant 23 : index
    %624 = memref.load %arg4[%c23_105] : memref<40xf32, #tpu.memory_space<smem>>
    %625 = vector.broadcast %624 : f32 to vector<8x128xf32>
    %626 = arith.mulf %619, %625 : vector<8x128xf32>
    %627 = arith.addf %577, %626 : vector<8x128xf32>
    %c2_106 = arith.constant 2 : index
    %628 = memref.load %arg2[%c2_106] : memref<30xf32, #tpu.memory_space<smem>>
    %c12_107 = arith.constant 12 : index
    %629 = memref.load %arg2[%c12_107] : memref<30xf32, #tpu.memory_space<smem>>
    %c22_108 = arith.constant 22 : index
    %630 = memref.load %arg2[%c22_108] : memref<30xf32, #tpu.memory_space<smem>>
    %c2_109 = arith.constant 2 : index
    %631 = memref.load %arg3[%c2_109] : memref<10xf32, #tpu.memory_space<smem>>
    %632 = vector.broadcast %628 : f32 to vector<8x128xf32>
    %633 = arith.mulf %519, %632 : vector<8x128xf32>
    %634 = vector.broadcast %629 : f32 to vector<8x128xf32>
    %635 = arith.mulf %521, %634 : vector<8x128xf32>
    %636 = arith.addf %633, %635 : vector<8x128xf32>
    %637 = vector.broadcast %630 : f32 to vector<8x128xf32>
    %638 = arith.mulf %523, %637 : vector<8x128xf32>
    %639 = arith.addf %636, %638 : vector<8x128xf32>
    %640 = vector.broadcast %631 : f32 to vector<8x128xf32>
    %641 = arith.addf %639, %640 : vector<8x128xf32>
    %cst_110 = arith.constant 0.000000e+00 : f32
    %642 = vector.broadcast %cst_110 : f32 to vector<8x128xf32>
    %643 = arith.maximumf %641, %642 : vector<8x128xf32>
    %644 = vector.broadcast %628 : f32 to vector<8x128xf32>
    %645 = arith.mulf %521, %644 : vector<8x128xf32>
    %646 = vector.broadcast %629 : f32 to vector<8x128xf32>
    %647 = arith.mulf %523, %646 : vector<8x128xf32>
    %648 = arith.addf %645, %647 : vector<8x128xf32>
    %649 = vector.broadcast %630 : f32 to vector<8x128xf32>
    %650 = arith.mulf %525, %649 : vector<8x128xf32>
    %651 = arith.addf %648, %650 : vector<8x128xf32>
    %652 = vector.broadcast %631 : f32 to vector<8x128xf32>
    %653 = arith.addf %651, %652 : vector<8x128xf32>
    %cst_111 = arith.constant 0.000000e+00 : f32
    %654 = vector.broadcast %cst_111 : f32 to vector<8x128xf32>
    %655 = arith.maximumf %653, %654 : vector<8x128xf32>
    %656 = arith.maximumf %643, %655 : vector<8x128xf32>
    %657 = vector.broadcast %628 : f32 to vector<8x128xf32>
    %658 = arith.mulf %523, %657 : vector<8x128xf32>
    %659 = vector.broadcast %629 : f32 to vector<8x128xf32>
    %660 = arith.mulf %525, %659 : vector<8x128xf32>
    %661 = arith.addf %658, %660 : vector<8x128xf32>
    %662 = vector.broadcast %630 : f32 to vector<8x128xf32>
    %663 = arith.mulf %527, %662 : vector<8x128xf32>
    %664 = arith.addf %661, %663 : vector<8x128xf32>
    %665 = vector.broadcast %631 : f32 to vector<8x128xf32>
    %666 = arith.addf %664, %665 : vector<8x128xf32>
    %cst_112 = arith.constant 0.000000e+00 : f32
    %667 = vector.broadcast %cst_112 : f32 to vector<8x128xf32>
    %668 = arith.maximumf %666, %667 : vector<8x128xf32>
    %669 = arith.maximumf %656, %668 : vector<8x128xf32>
    %c5_113 = arith.constant 5 : index
    %670 = memref.load %arg4[%c5_113] : memref<40xf32, #tpu.memory_space<smem>>
    %671 = vector.broadcast %670 : f32 to vector<8x128xf32>
    %672 = arith.mulf %669, %671 : vector<8x128xf32>
    %673 = arith.addf %623, %672 : vector<8x128xf32>
    %c25_114 = arith.constant 25 : index
    %674 = memref.load %arg4[%c25_114] : memref<40xf32, #tpu.memory_space<smem>>
    %675 = vector.broadcast %674 : f32 to vector<8x128xf32>
    %676 = arith.mulf %669, %675 : vector<8x128xf32>
    %677 = arith.addf %627, %676 : vector<8x128xf32>
    %c3_115 = arith.constant 3 : index
    %678 = memref.load %arg2[%c3_115] : memref<30xf32, #tpu.memory_space<smem>>
    %c13_116 = arith.constant 13 : index
    %679 = memref.load %arg2[%c13_116] : memref<30xf32, #tpu.memory_space<smem>>
    %c23_117 = arith.constant 23 : index
    %680 = memref.load %arg2[%c23_117] : memref<30xf32, #tpu.memory_space<smem>>
    %c3_118 = arith.constant 3 : index
    %681 = memref.load %arg3[%c3_118] : memref<10xf32, #tpu.memory_space<smem>>
    %682 = vector.broadcast %678 : f32 to vector<8x128xf32>
    %683 = arith.mulf %519, %682 : vector<8x128xf32>
    %684 = vector.broadcast %679 : f32 to vector<8x128xf32>
    %685 = arith.mulf %521, %684 : vector<8x128xf32>
    %686 = arith.addf %683, %685 : vector<8x128xf32>
    %687 = vector.broadcast %680 : f32 to vector<8x128xf32>
    %688 = arith.mulf %523, %687 : vector<8x128xf32>
    %689 = arith.addf %686, %688 : vector<8x128xf32>
    %690 = vector.broadcast %681 : f32 to vector<8x128xf32>
    %691 = arith.addf %689, %690 : vector<8x128xf32>
    %cst_119 = arith.constant 0.000000e+00 : f32
    %692 = vector.broadcast %cst_119 : f32 to vector<8x128xf32>
    %693 = arith.maximumf %691, %692 : vector<8x128xf32>
    %694 = vector.broadcast %678 : f32 to vector<8x128xf32>
    %695 = arith.mulf %521, %694 : vector<8x128xf32>
    %696 = vector.broadcast %679 : f32 to vector<8x128xf32>
    %697 = arith.mulf %523, %696 : vector<8x128xf32>
    %698 = arith.addf %695, %697 : vector<8x128xf32>
    %699 = vector.broadcast %680 : f32 to vector<8x128xf32>
    %700 = arith.mulf %525, %699 : vector<8x128xf32>
    %701 = arith.addf %698, %700 : vector<8x128xf32>
    %702 = vector.broadcast %681 : f32 to vector<8x128xf32>
    %703 = arith.addf %701, %702 : vector<8x128xf32>
    %cst_120 = arith.constant 0.000000e+00 : f32
    %704 = vector.broadcast %cst_120 : f32 to vector<8x128xf32>
    %705 = arith.maximumf %703, %704 : vector<8x128xf32>
    %706 = arith.maximumf %693, %705 : vector<8x128xf32>
    %707 = vector.broadcast %678 : f32 to vector<8x128xf32>
    %708 = arith.mulf %523, %707 : vector<8x128xf32>
    %709 = vector.broadcast %679 : f32 to vector<8x128xf32>
    %710 = arith.mulf %525, %709 : vector<8x128xf32>
    %711 = arith.addf %708, %710 : vector<8x128xf32>
    %712 = vector.broadcast %680 : f32 to vector<8x128xf32>
    %713 = arith.mulf %527, %712 : vector<8x128xf32>
    %714 = arith.addf %711, %713 : vector<8x128xf32>
    %715 = vector.broadcast %681 : f32 to vector<8x128xf32>
    %716 = arith.addf %714, %715 : vector<8x128xf32>
    %cst_121 = arith.constant 0.000000e+00 : f32
    %717 = vector.broadcast %cst_121 : f32 to vector<8x128xf32>
    %718 = arith.maximumf %716, %717 : vector<8x128xf32>
    %719 = arith.maximumf %706, %718 : vector<8x128xf32>
    %c7_122 = arith.constant 7 : index
    %720 = memref.load %arg4[%c7_122] : memref<40xf32, #tpu.memory_space<smem>>
    %721 = vector.broadcast %720 : f32 to vector<8x128xf32>
    %722 = arith.mulf %719, %721 : vector<8x128xf32>
    %723 = arith.addf %673, %722 : vector<8x128xf32>
    %c27_123 = arith.constant 27 : index
    %724 = memref.load %arg4[%c27_123] : memref<40xf32, #tpu.memory_space<smem>>
    %725 = vector.broadcast %724 : f32 to vector<8x128xf32>
    %726 = arith.mulf %719, %725 : vector<8x128xf32>
    %727 = arith.addf %677, %726 : vector<8x128xf32>
    %c4_124 = arith.constant 4 : index
    %728 = memref.load %arg2[%c4_124] : memref<30xf32, #tpu.memory_space<smem>>
    %c14_125 = arith.constant 14 : index
    %729 = memref.load %arg2[%c14_125] : memref<30xf32, #tpu.memory_space<smem>>
    %c24_126 = arith.constant 24 : index
    %730 = memref.load %arg2[%c24_126] : memref<30xf32, #tpu.memory_space<smem>>
    %c4_127 = arith.constant 4 : index
    %731 = memref.load %arg3[%c4_127] : memref<10xf32, #tpu.memory_space<smem>>
    %732 = vector.broadcast %728 : f32 to vector<8x128xf32>
    %733 = arith.mulf %519, %732 : vector<8x128xf32>
    %734 = vector.broadcast %729 : f32 to vector<8x128xf32>
    %735 = arith.mulf %521, %734 : vector<8x128xf32>
    %736 = arith.addf %733, %735 : vector<8x128xf32>
    %737 = vector.broadcast %730 : f32 to vector<8x128xf32>
    %738 = arith.mulf %523, %737 : vector<8x128xf32>
    %739 = arith.addf %736, %738 : vector<8x128xf32>
    %740 = vector.broadcast %731 : f32 to vector<8x128xf32>
    %741 = arith.addf %739, %740 : vector<8x128xf32>
    %cst_128 = arith.constant 0.000000e+00 : f32
    %742 = vector.broadcast %cst_128 : f32 to vector<8x128xf32>
    %743 = arith.maximumf %741, %742 : vector<8x128xf32>
    %744 = vector.broadcast %728 : f32 to vector<8x128xf32>
    %745 = arith.mulf %521, %744 : vector<8x128xf32>
    %746 = vector.broadcast %729 : f32 to vector<8x128xf32>
    %747 = arith.mulf %523, %746 : vector<8x128xf32>
    %748 = arith.addf %745, %747 : vector<8x128xf32>
    %749 = vector.broadcast %730 : f32 to vector<8x128xf32>
    %750 = arith.mulf %525, %749 : vector<8x128xf32>
    %751 = arith.addf %748, %750 : vector<8x128xf32>
    %752 = vector.broadcast %731 : f32 to vector<8x128xf32>
    %753 = arith.addf %751, %752 : vector<8x128xf32>
    %cst_129 = arith.constant 0.000000e+00 : f32
    %754 = vector.broadcast %cst_129 : f32 to vector<8x128xf32>
    %755 = arith.maximumf %753, %754 : vector<8x128xf32>
    %756 = arith.maximumf %743, %755 : vector<8x128xf32>
    %757 = vector.broadcast %728 : f32 to vector<8x128xf32>
    %758 = arith.mulf %523, %757 : vector<8x128xf32>
    %759 = vector.broadcast %729 : f32 to vector<8x128xf32>
    %760 = arith.mulf %525, %759 : vector<8x128xf32>
    %761 = arith.addf %758, %760 : vector<8x128xf32>
    %762 = vector.broadcast %730 : f32 to vector<8x128xf32>
    %763 = arith.mulf %527, %762 : vector<8x128xf32>
    %764 = arith.addf %761, %763 : vector<8x128xf32>
    %765 = vector.broadcast %731 : f32 to vector<8x128xf32>
    %766 = arith.addf %764, %765 : vector<8x128xf32>
    %cst_130 = arith.constant 0.000000e+00 : f32
    %767 = vector.broadcast %cst_130 : f32 to vector<8x128xf32>
    %768 = arith.maximumf %766, %767 : vector<8x128xf32>
    %769 = arith.maximumf %756, %768 : vector<8x128xf32>
    %c9_131 = arith.constant 9 : index
    %770 = memref.load %arg4[%c9_131] : memref<40xf32, #tpu.memory_space<smem>>
    %771 = vector.broadcast %770 : f32 to vector<8x128xf32>
    %772 = arith.mulf %769, %771 : vector<8x128xf32>
    %773 = arith.addf %723, %772 : vector<8x128xf32>
    %c29_132 = arith.constant 29 : index
    %774 = memref.load %arg4[%c29_132] : memref<40xf32, #tpu.memory_space<smem>>
    %775 = vector.broadcast %774 : f32 to vector<8x128xf32>
    %776 = arith.mulf %769, %775 : vector<8x128xf32>
    %777 = arith.addf %727, %776 : vector<8x128xf32>
    %c5_133 = arith.constant 5 : index
    %778 = memref.load %arg2[%c5_133] : memref<30xf32, #tpu.memory_space<smem>>
    %c15_134 = arith.constant 15 : index
    %779 = memref.load %arg2[%c15_134] : memref<30xf32, #tpu.memory_space<smem>>
    %c25_135 = arith.constant 25 : index
    %780 = memref.load %arg2[%c25_135] : memref<30xf32, #tpu.memory_space<smem>>
    %c5_136 = arith.constant 5 : index
    %781 = memref.load %arg3[%c5_136] : memref<10xf32, #tpu.memory_space<smem>>
    %782 = vector.broadcast %778 : f32 to vector<8x128xf32>
    %783 = arith.mulf %519, %782 : vector<8x128xf32>
    %784 = vector.broadcast %779 : f32 to vector<8x128xf32>
    %785 = arith.mulf %521, %784 : vector<8x128xf32>
    %786 = arith.addf %783, %785 : vector<8x128xf32>
    %787 = vector.broadcast %780 : f32 to vector<8x128xf32>
    %788 = arith.mulf %523, %787 : vector<8x128xf32>
    %789 = arith.addf %786, %788 : vector<8x128xf32>
    %790 = vector.broadcast %781 : f32 to vector<8x128xf32>
    %791 = arith.addf %789, %790 : vector<8x128xf32>
    %cst_137 = arith.constant 0.000000e+00 : f32
    %792 = vector.broadcast %cst_137 : f32 to vector<8x128xf32>
    %793 = arith.maximumf %791, %792 : vector<8x128xf32>
    %794 = vector.broadcast %778 : f32 to vector<8x128xf32>
    %795 = arith.mulf %521, %794 : vector<8x128xf32>
    %796 = vector.broadcast %779 : f32 to vector<8x128xf32>
    %797 = arith.mulf %523, %796 : vector<8x128xf32>
    %798 = arith.addf %795, %797 : vector<8x128xf32>
    %799 = vector.broadcast %780 : f32 to vector<8x128xf32>
    %800 = arith.mulf %525, %799 : vector<8x128xf32>
    %801 = arith.addf %798, %800 : vector<8x128xf32>
    %802 = vector.broadcast %781 : f32 to vector<8x128xf32>
    %803 = arith.addf %801, %802 : vector<8x128xf32>
    %cst_138 = arith.constant 0.000000e+00 : f32
    %804 = vector.broadcast %cst_138 : f32 to vector<8x128xf32>
    %805 = arith.maximumf %803, %804 : vector<8x128xf32>
    %806 = arith.maximumf %793, %805 : vector<8x128xf32>
    %807 = vector.broadcast %778 : f32 to vector<8x128xf32>
    %808 = arith.mulf %523, %807 : vector<8x128xf32>
    %809 = vector.broadcast %779 : f32 to vector<8x128xf32>
    %810 = arith.mulf %525, %809 : vector<8x128xf32>
    %811 = arith.addf %808, %810 : vector<8x128xf32>
    %812 = vector.broadcast %780 : f32 to vector<8x128xf32>
    %813 = arith.mulf %527, %812 : vector<8x128xf32>
    %814 = arith.addf %811, %813 : vector<8x128xf32>
    %815 = vector.broadcast %781 : f32 to vector<8x128xf32>
    %816 = arith.addf %814, %815 : vector<8x128xf32>
    %cst_139 = arith.constant 0.000000e+00 : f32
    %817 = vector.broadcast %cst_139 : f32 to vector<8x128xf32>
    %818 = arith.maximumf %816, %817 : vector<8x128xf32>
    %819 = arith.maximumf %806, %818 : vector<8x128xf32>
    %c11_140 = arith.constant 11 : index
    %820 = memref.load %arg4[%c11_140] : memref<40xf32, #tpu.memory_space<smem>>
    %821 = vector.broadcast %820 : f32 to vector<8x128xf32>
    %822 = arith.mulf %819, %821 : vector<8x128xf32>
    %823 = arith.addf %773, %822 : vector<8x128xf32>
    %c31 = arith.constant 31 : index
    %824 = memref.load %arg4[%c31] : memref<40xf32, #tpu.memory_space<smem>>
    %825 = vector.broadcast %824 : f32 to vector<8x128xf32>
    %826 = arith.mulf %819, %825 : vector<8x128xf32>
    %827 = arith.addf %777, %826 : vector<8x128xf32>
    %c6_141 = arith.constant 6 : index
    %828 = memref.load %arg2[%c6_141] : memref<30xf32, #tpu.memory_space<smem>>
    %c16_142 = arith.constant 16 : index
    %829 = memref.load %arg2[%c16_142] : memref<30xf32, #tpu.memory_space<smem>>
    %c26_143 = arith.constant 26 : index
    %830 = memref.load %arg2[%c26_143] : memref<30xf32, #tpu.memory_space<smem>>
    %c6_144 = arith.constant 6 : index
    %831 = memref.load %arg3[%c6_144] : memref<10xf32, #tpu.memory_space<smem>>
    %832 = vector.broadcast %828 : f32 to vector<8x128xf32>
    %833 = arith.mulf %519, %832 : vector<8x128xf32>
    %834 = vector.broadcast %829 : f32 to vector<8x128xf32>
    %835 = arith.mulf %521, %834 : vector<8x128xf32>
    %836 = arith.addf %833, %835 : vector<8x128xf32>
    %837 = vector.broadcast %830 : f32 to vector<8x128xf32>
    %838 = arith.mulf %523, %837 : vector<8x128xf32>
    %839 = arith.addf %836, %838 : vector<8x128xf32>
    %840 = vector.broadcast %831 : f32 to vector<8x128xf32>
    %841 = arith.addf %839, %840 : vector<8x128xf32>
    %cst_145 = arith.constant 0.000000e+00 : f32
    %842 = vector.broadcast %cst_145 : f32 to vector<8x128xf32>
    %843 = arith.maximumf %841, %842 : vector<8x128xf32>
    %844 = vector.broadcast %828 : f32 to vector<8x128xf32>
    %845 = arith.mulf %521, %844 : vector<8x128xf32>
    %846 = vector.broadcast %829 : f32 to vector<8x128xf32>
    %847 = arith.mulf %523, %846 : vector<8x128xf32>
    %848 = arith.addf %845, %847 : vector<8x128xf32>
    %849 = vector.broadcast %830 : f32 to vector<8x128xf32>
    %850 = arith.mulf %525, %849 : vector<8x128xf32>
    %851 = arith.addf %848, %850 : vector<8x128xf32>
    %852 = vector.broadcast %831 : f32 to vector<8x128xf32>
    %853 = arith.addf %851, %852 : vector<8x128xf32>
    %cst_146 = arith.constant 0.000000e+00 : f32
    %854 = vector.broadcast %cst_146 : f32 to vector<8x128xf32>
    %855 = arith.maximumf %853, %854 : vector<8x128xf32>
    %856 = arith.maximumf %843, %855 : vector<8x128xf32>
    %857 = vector.broadcast %828 : f32 to vector<8x128xf32>
    %858 = arith.mulf %523, %857 : vector<8x128xf32>
    %859 = vector.broadcast %829 : f32 to vector<8x128xf32>
    %860 = arith.mulf %525, %859 : vector<8x128xf32>
    %861 = arith.addf %858, %860 : vector<8x128xf32>
    %862 = vector.broadcast %830 : f32 to vector<8x128xf32>
    %863 = arith.mulf %527, %862 : vector<8x128xf32>
    %864 = arith.addf %861, %863 : vector<8x128xf32>
    %865 = vector.broadcast %831 : f32 to vector<8x128xf32>
    %866 = arith.addf %864, %865 : vector<8x128xf32>
    %cst_147 = arith.constant 0.000000e+00 : f32
    %867 = vector.broadcast %cst_147 : f32 to vector<8x128xf32>
    %868 = arith.maximumf %866, %867 : vector<8x128xf32>
    %869 = arith.maximumf %856, %868 : vector<8x128xf32>
    %c13_148 = arith.constant 13 : index
    %870 = memref.load %arg4[%c13_148] : memref<40xf32, #tpu.memory_space<smem>>
    %871 = vector.broadcast %870 : f32 to vector<8x128xf32>
    %872 = arith.mulf %869, %871 : vector<8x128xf32>
    %873 = arith.addf %823, %872 : vector<8x128xf32>
    %c33 = arith.constant 33 : index
    %874 = memref.load %arg4[%c33] : memref<40xf32, #tpu.memory_space<smem>>
    %875 = vector.broadcast %874 : f32 to vector<8x128xf32>
    %876 = arith.mulf %869, %875 : vector<8x128xf32>
    %877 = arith.addf %827, %876 : vector<8x128xf32>
    %c7_149 = arith.constant 7 : index
    %878 = memref.load %arg2[%c7_149] : memref<30xf32, #tpu.memory_space<smem>>
    %c17_150 = arith.constant 17 : index
    %879 = memref.load %arg2[%c17_150] : memref<30xf32, #tpu.memory_space<smem>>
    %c27_151 = arith.constant 27 : index
    %880 = memref.load %arg2[%c27_151] : memref<30xf32, #tpu.memory_space<smem>>
    %c7_152 = arith.constant 7 : index
    %881 = memref.load %arg3[%c7_152] : memref<10xf32, #tpu.memory_space<smem>>
    %882 = vector.broadcast %878 : f32 to vector<8x128xf32>
    %883 = arith.mulf %519, %882 : vector<8x128xf32>
    %884 = vector.broadcast %879 : f32 to vector<8x128xf32>
    %885 = arith.mulf %521, %884 : vector<8x128xf32>
    %886 = arith.addf %883, %885 : vector<8x128xf32>
    %887 = vector.broadcast %880 : f32 to vector<8x128xf32>
    %888 = arith.mulf %523, %887 : vector<8x128xf32>
    %889 = arith.addf %886, %888 : vector<8x128xf32>
    %890 = vector.broadcast %881 : f32 to vector<8x128xf32>
    %891 = arith.addf %889, %890 : vector<8x128xf32>
    %cst_153 = arith.constant 0.000000e+00 : f32
    %892 = vector.broadcast %cst_153 : f32 to vector<8x128xf32>
    %893 = arith.maximumf %891, %892 : vector<8x128xf32>
    %894 = vector.broadcast %878 : f32 to vector<8x128xf32>
    %895 = arith.mulf %521, %894 : vector<8x128xf32>
    %896 = vector.broadcast %879 : f32 to vector<8x128xf32>
    %897 = arith.mulf %523, %896 : vector<8x128xf32>
    %898 = arith.addf %895, %897 : vector<8x128xf32>
    %899 = vector.broadcast %880 : f32 to vector<8x128xf32>
    %900 = arith.mulf %525, %899 : vector<8x128xf32>
    %901 = arith.addf %898, %900 : vector<8x128xf32>
    %902 = vector.broadcast %881 : f32 to vector<8x128xf32>
    %903 = arith.addf %901, %902 : vector<8x128xf32>
    %cst_154 = arith.constant 0.000000e+00 : f32
    %904 = vector.broadcast %cst_154 : f32 to vector<8x128xf32>
    %905 = arith.maximumf %903, %904 : vector<8x128xf32>
    %906 = arith.maximumf %893, %905 : vector<8x128xf32>
    %907 = vector.broadcast %878 : f32 to vector<8x128xf32>
    %908 = arith.mulf %523, %907 : vector<8x128xf32>
    %909 = vector.broadcast %879 : f32 to vector<8x128xf32>
    %910 = arith.mulf %525, %909 : vector<8x128xf32>
    %911 = arith.addf %908, %910 : vector<8x128xf32>
    %912 = vector.broadcast %880 : f32 to vector<8x128xf32>
    %913 = arith.mulf %527, %912 : vector<8x128xf32>
    %914 = arith.addf %911, %913 : vector<8x128xf32>
    %915 = vector.broadcast %881 : f32 to vector<8x128xf32>
    %916 = arith.addf %914, %915 : vector<8x128xf32>
    %cst_155 = arith.constant 0.000000e+00 : f32
    %917 = vector.broadcast %cst_155 : f32 to vector<8x128xf32>
    %918 = arith.maximumf %916, %917 : vector<8x128xf32>
    %919 = arith.maximumf %906, %918 : vector<8x128xf32>
    %c15_156 = arith.constant 15 : index
    %920 = memref.load %arg4[%c15_156] : memref<40xf32, #tpu.memory_space<smem>>
    %921 = vector.broadcast %920 : f32 to vector<8x128xf32>
    %922 = arith.mulf %919, %921 : vector<8x128xf32>
    %923 = arith.addf %873, %922 : vector<8x128xf32>
    %c35 = arith.constant 35 : index
    %924 = memref.load %arg4[%c35] : memref<40xf32, #tpu.memory_space<smem>>
    %925 = vector.broadcast %924 : f32 to vector<8x128xf32>
    %926 = arith.mulf %919, %925 : vector<8x128xf32>
    %927 = arith.addf %877, %926 : vector<8x128xf32>
    %c8_157 = arith.constant 8 : index
    %928 = memref.load %arg2[%c8_157] : memref<30xf32, #tpu.memory_space<smem>>
    %c18_158 = arith.constant 18 : index
    %929 = memref.load %arg2[%c18_158] : memref<30xf32, #tpu.memory_space<smem>>
    %c28_159 = arith.constant 28 : index
    %930 = memref.load %arg2[%c28_159] : memref<30xf32, #tpu.memory_space<smem>>
    %c8_160 = arith.constant 8 : index
    %931 = memref.load %arg3[%c8_160] : memref<10xf32, #tpu.memory_space<smem>>
    %932 = vector.broadcast %928 : f32 to vector<8x128xf32>
    %933 = arith.mulf %519, %932 : vector<8x128xf32>
    %934 = vector.broadcast %929 : f32 to vector<8x128xf32>
    %935 = arith.mulf %521, %934 : vector<8x128xf32>
    %936 = arith.addf %933, %935 : vector<8x128xf32>
    %937 = vector.broadcast %930 : f32 to vector<8x128xf32>
    %938 = arith.mulf %523, %937 : vector<8x128xf32>
    %939 = arith.addf %936, %938 : vector<8x128xf32>
    %940 = vector.broadcast %931 : f32 to vector<8x128xf32>
    %941 = arith.addf %939, %940 : vector<8x128xf32>
    %cst_161 = arith.constant 0.000000e+00 : f32
    %942 = vector.broadcast %cst_161 : f32 to vector<8x128xf32>
    %943 = arith.maximumf %941, %942 : vector<8x128xf32>
    %944 = vector.broadcast %928 : f32 to vector<8x128xf32>
    %945 = arith.mulf %521, %944 : vector<8x128xf32>
    %946 = vector.broadcast %929 : f32 to vector<8x128xf32>
    %947 = arith.mulf %523, %946 : vector<8x128xf32>
    %948 = arith.addf %945, %947 : vector<8x128xf32>
    %949 = vector.broadcast %930 : f32 to vector<8x128xf32>
    %950 = arith.mulf %525, %949 : vector<8x128xf32>
    %951 = arith.addf %948, %950 : vector<8x128xf32>
    %952 = vector.broadcast %931 : f32 to vector<8x128xf32>
    %953 = arith.addf %951, %952 : vector<8x128xf32>
    %cst_162 = arith.constant 0.000000e+00 : f32
    %954 = vector.broadcast %cst_162 : f32 to vector<8x128xf32>
    %955 = arith.maximumf %953, %954 : vector<8x128xf32>
    %956 = arith.maximumf %943, %955 : vector<8x128xf32>
    %957 = vector.broadcast %928 : f32 to vector<8x128xf32>
    %958 = arith.mulf %523, %957 : vector<8x128xf32>
    %959 = vector.broadcast %929 : f32 to vector<8x128xf32>
    %960 = arith.mulf %525, %959 : vector<8x128xf32>
    %961 = arith.addf %958, %960 : vector<8x128xf32>
    %962 = vector.broadcast %930 : f32 to vector<8x128xf32>
    %963 = arith.mulf %527, %962 : vector<8x128xf32>
    %964 = arith.addf %961, %963 : vector<8x128xf32>
    %965 = vector.broadcast %931 : f32 to vector<8x128xf32>
    %966 = arith.addf %964, %965 : vector<8x128xf32>
    %cst_163 = arith.constant 0.000000e+00 : f32
    %967 = vector.broadcast %cst_163 : f32 to vector<8x128xf32>
    %968 = arith.maximumf %966, %967 : vector<8x128xf32>
    %969 = arith.maximumf %956, %968 : vector<8x128xf32>
    %c17_164 = arith.constant 17 : index
    %970 = memref.load %arg4[%c17_164] : memref<40xf32, #tpu.memory_space<smem>>
    %971 = vector.broadcast %970 : f32 to vector<8x128xf32>
    %972 = arith.mulf %969, %971 : vector<8x128xf32>
    %973 = arith.addf %923, %972 : vector<8x128xf32>
    %c37 = arith.constant 37 : index
    %974 = memref.load %arg4[%c37] : memref<40xf32, #tpu.memory_space<smem>>
    %975 = vector.broadcast %974 : f32 to vector<8x128xf32>
    %976 = arith.mulf %969, %975 : vector<8x128xf32>
    %977 = arith.addf %927, %976 : vector<8x128xf32>
    %c9_165 = arith.constant 9 : index
    %978 = memref.load %arg2[%c9_165] : memref<30xf32, #tpu.memory_space<smem>>
    %c19_166 = arith.constant 19 : index
    %979 = memref.load %arg2[%c19_166] : memref<30xf32, #tpu.memory_space<smem>>
    %c29_167 = arith.constant 29 : index
    %980 = memref.load %arg2[%c29_167] : memref<30xf32, #tpu.memory_space<smem>>
    %c9_168 = arith.constant 9 : index
    %981 = memref.load %arg3[%c9_168] : memref<10xf32, #tpu.memory_space<smem>>
    %982 = vector.broadcast %978 : f32 to vector<8x128xf32>
    %983 = arith.mulf %519, %982 : vector<8x128xf32>
    %984 = vector.broadcast %979 : f32 to vector<8x128xf32>
    %985 = arith.mulf %521, %984 : vector<8x128xf32>
    %986 = arith.addf %983, %985 : vector<8x128xf32>
    %987 = vector.broadcast %980 : f32 to vector<8x128xf32>
    %988 = arith.mulf %523, %987 : vector<8x128xf32>
    %989 = arith.addf %986, %988 : vector<8x128xf32>
    %990 = vector.broadcast %981 : f32 to vector<8x128xf32>
    %991 = arith.addf %989, %990 : vector<8x128xf32>
    %cst_169 = arith.constant 0.000000e+00 : f32
    %992 = vector.broadcast %cst_169 : f32 to vector<8x128xf32>
    %993 = arith.maximumf %991, %992 : vector<8x128xf32>
    %994 = vector.broadcast %978 : f32 to vector<8x128xf32>
    %995 = arith.mulf %521, %994 : vector<8x128xf32>
    %996 = vector.broadcast %979 : f32 to vector<8x128xf32>
    %997 = arith.mulf %523, %996 : vector<8x128xf32>
    %998 = arith.addf %995, %997 : vector<8x128xf32>
    %999 = vector.broadcast %980 : f32 to vector<8x128xf32>
    %1000 = arith.mulf %525, %999 : vector<8x128xf32>
    %1001 = arith.addf %998, %1000 : vector<8x128xf32>
    %1002 = vector.broadcast %981 : f32 to vector<8x128xf32>
    %1003 = arith.addf %1001, %1002 : vector<8x128xf32>
    %cst_170 = arith.constant 0.000000e+00 : f32
    %1004 = vector.broadcast %cst_170 : f32 to vector<8x128xf32>
    %1005 = arith.maximumf %1003, %1004 : vector<8x128xf32>
    %1006 = arith.maximumf %993, %1005 : vector<8x128xf32>
    %1007 = vector.broadcast %978 : f32 to vector<8x128xf32>
    %1008 = arith.mulf %523, %1007 : vector<8x128xf32>
    %1009 = vector.broadcast %979 : f32 to vector<8x128xf32>
    %1010 = arith.mulf %525, %1009 : vector<8x128xf32>
    %1011 = arith.addf %1008, %1010 : vector<8x128xf32>
    %1012 = vector.broadcast %980 : f32 to vector<8x128xf32>
    %1013 = arith.mulf %527, %1012 : vector<8x128xf32>
    %1014 = arith.addf %1011, %1013 : vector<8x128xf32>
    %1015 = vector.broadcast %981 : f32 to vector<8x128xf32>
    %1016 = arith.addf %1014, %1015 : vector<8x128xf32>
    %cst_171 = arith.constant 0.000000e+00 : f32
    %1017 = vector.broadcast %cst_171 : f32 to vector<8x128xf32>
    %1018 = arith.maximumf %1016, %1017 : vector<8x128xf32>
    %1019 = arith.maximumf %1006, %1018 : vector<8x128xf32>
    %c19_172 = arith.constant 19 : index
    %1020 = memref.load %arg4[%c19_172] : memref<40xf32, #tpu.memory_space<smem>>
    %1021 = vector.broadcast %1020 : f32 to vector<8x128xf32>
    %1022 = arith.mulf %1019, %1021 : vector<8x128xf32>
    %1023 = arith.addf %973, %1022 : vector<8x128xf32>
    %c39 = arith.constant 39 : index
    %1024 = memref.load %arg4[%c39] : memref<40xf32, #tpu.memory_space<smem>>
    %1025 = vector.broadcast %1024 : f32 to vector<8x128xf32>
    %1026 = arith.mulf %1019, %1025 : vector<8x128xf32>
    %1027 = arith.addf %977, %1026 : vector<8x128xf32>
    %c0_173 = arith.constant 0 : index
    %c0_174 = arith.constant 0 : index
    %c0_175 = arith.constant 0 : index
    %1028 = vector.load %arg6[%c0_173, %c0_174, %c0_175] : memref<2x8x128xf32, #tpu.memory_space<vmem>>, vector<1x8x128xf32>
    %1029 = vector.shape_cast %1028 : vector<1x8x128xf32> to vector<8x128xf32>
    %1030 = vector.shape_cast %1023 : vector<8x128xf32> to vector<1x8x128xf32>
    tpu.vector_store %arg6[%c0_173, %c0_174, %c0_175], %1030 {strides = array<i32>} : memref<2x8x128xf32, #tpu.memory_space<vmem>>, vector<1x8x128xf32>,
    %c1_176 = arith.constant 1 : index
    %c0_177 = arith.constant 0 : index
    %c0_178 = arith.constant 0 : index
    %1031 = vector.load %arg6[%c1_176, %c0_177, %c0_178] : memref<2x8x128xf32, #tpu.memory_space<vmem>>, vector<1x8x128xf32>
    %1032 = vector.shape_cast %1031 : vector<1x8x128xf32> to vector<8x128xf32>
    %1033 = vector.shape_cast %1027 : vector<8x128xf32> to vector<1x8x128xf32>
    tpu.vector_store %arg6[%c1_176, %c0_177, %c0_178], %1033 {strides = array<i32>} : memref<2x8x128xf32, #tpu.memory_space<vmem>>, vector<1x8x128xf32>,
    return
  }
  func.func @transform_0(%arg0: i32) -> (i32, i32, i32) {
    %c0_i32 = arith.constant 0 : i32
    %c0_i32_0 = arith.constant 0 : i32
    %c0_i32_1 = arith.constant 0 : i32
    return %c0_i32, %arg0, %c0_i32_0 : i32, i32, i32
  }
  func.func @transform_1(%arg0: i32) -> i32 {
    %c0_i32 = arith.constant 0 : i32
    %c0_i32_0 = arith.constant 0 : i32
    return %c0_i32 : i32
  }
  func.func @transform_2(%arg0: i32) -> i32 {
    %c0_i32 = arith.constant 0 : i32
    %c0_i32_0 = arith.constant 0 : i32
    return %c0_i32 : i32
  }
  func.func @transform_3(%arg0: i32) -> i32 {
    %c0_i32 = arith.constant 0 : i32
    %c0_i32_0 = arith.constant 0 : i32
    return %c0_i32 : i32
  }
  func.func @transform_4(%arg0: i32) -> i32 {
    %c0_i32 = arith.constant 0 : i32
    %c0_i32_0 = arith.constant 0 : i32
    return %c0_i32 : i32
  }
  func.func @transform_5(%arg0: i32) -> (i32, i32, i32) {
    %c0_i32 = arith.constant 0 : i32
    %c0_i32_0 = arith.constant 0 : i32
    %c0_i32_1 = arith.constant 0 : i32
    return %c0_i32, %arg0, %c0_i32_0 : i32, i32, i32
  }
}

</mosaic_0001>

<bundles_post_ra>
// kernel: tpu_custom_call.1
= control target key start
LH: loop header
LB: loop body
LE: loop exit
PB: predicated region body
PF: predicated region fallthrough
CT: control target
= control target key end

     0   :  { %10 = vsyncpa [#allocation3], 0  ;;  %s1833_s0 = inlined_call_operand.hbm [shape: f32[8,8,128], index: 0, kind: input, shape index: {}]   ;;  %s1834_s1 = inlined_call_operand.vmem [shape: f32[30], index: 1, kind: input, shape index: {}]   ;;  %s1835_s2 = inlined_call_operand.vmem [shape: f32[10], index: 2, kind: input, shape index: {}]   ;;  %s1836_s3 = inlined_call_operand.vmem [shape: f32[40], index: 3, kind: input, shape index: {}]   ;;  %s1837_s4 = inlined_call_operand.vmem [shape: f32[2], index: 4, kind: input, shape index: {}]   ;;  %s1838_s5 = inlined_call_operand.hbm [shape: f32[2,8,128], index: 5, kind: output, shape index: {}]  }
   0x1   :  { %11 = vsyncpa [#allocation5], 0 }
   0x2   :  { %12 = vsyncpa [#allocation8], 0 }
   0x3   :  { %13 = vsyncpa [#allocation11], 0  ;;  %s43_s20 = sshll.u32 %s1835_s2, 4  ;;  %s44_s20 = int_to_ptr.vmem [resolvable:$true] %s43_s20 }
   0x4   :  { %14 = vsyncpa [#allocation4], 0  ;;  %s915_s21 = scalar_lea.vmem %s44_s20, 16  ;;  %p920_p1 = scmp.lt.s32.totalorder %s44_s20, %s44_s20 }
   0x5   :  { %p916_p0 = scmp.ne.s32.totalorder %s44_s20, %s915_s21  ;;  %p921_p2 = scmp.lt.s32.totalorder %s915_s21, %s915_s21 }
   0x7   :  { %p922_p3 = por %p921_p2, %p920_p1 }
   0x9   :  { %p923_p4 = pnand %p922_p3, %p916_p0 }
   0xb   :  { %926 = shalt.err (!%p923_p4)
}
   0xc   :  { %s1017_s22 = smov [#allocation7]   ;;  %s1018_s23 = smov [#allocation2]  }
   0xd   :  { %46 = dma.vmem_to_smem %s44_s20, 16, %s1017_s22, [#allocation8]  }
   0xe   :  { %s20_s24 = sshll.u32 %s1018_s23, 4  ;;  %s927_s27 = scalar_lea.hbm %s1833_s0, 1024  ;;  %s21_s24 = int_to_ptr.vmem [resolvable:$true] %s20_s24 }
   0xf   :  { %p928_p5 = scmp.ne.s32.totalorder %s1833_s0, %s927_s27  ;;  %p931_p6 = scmp.lt.u32.totalorder %s927_s27, %s1833_s0 }
  0x11   :  { %p933_p7 = pnand %p931_p6, %p928_p5 }
  0x13   :  { %936 = shalt.err (!%p933_p7)
}
  0x14   :  { %s937_s6 = scalar_lea.vmem %s21_s24, 1024  ;;  %p942_p9 = scmp.lt.s32.totalorder %s21_s24, %s21_s24 }
  0x15   :  { %p938_p8 = scmp.ne.s32.totalorder %s21_s24, %s937_s6  ;;  %p943_p10 = scmp.lt.s32.totalorder %s937_s6, %s937_s6 }
  0x17   :  { %p944_p11 = por %p943_p10, %p942_p9 }
  0x19   :  { %p945_p12 = pnand %p944_p11, %p938_p8 }
  0x1b   :  { %948 = shalt.err (!%p945_p12)
}
  0x1c   :  { %s1019_s7 = smov 128   ;;  %s1020_s8 = smov 8  }
  0x1d   :  { %26 = dma.hbm_to_vmem [thread:$0]  %s1833_s0, 1024, %s21_s24, [#allocation3], %s1019_s7, %s1019_s7, %s1020_s8  }
  0x1e   :  { %s33_s13 = sshll.u32 %s1834_s1, 4  ;;  %s53_s16 = sshll.u32 %s1836_s3, 4  ;;  %s34_s13 = int_to_ptr.vmem [resolvable:$true] %s33_s13  ;;  %s54_s16 = int_to_ptr.vmem [resolvable:$true] %s53_s16 }
  0x1f   :  { %s949_s17 = scalar_lea.vmem %s34_s13, 16  ;;  %p954_p0 = scmp.lt.s32.totalorder %s34_s13, %s34_s13 }
  0x20   :  { %p950_p13 = scmp.ne.s32.totalorder %s34_s13, %s949_s17  ;;  %p955_p1 = scmp.lt.s32.totalorder %s949_s17, %s949_s17 }
  0x22   :  { %p956_p2 = por %p955_p1, %p954_p0 }
  0x24   :  { %p957_p3 = pnand %p956_p2, %p950_p13 }
  0x26   :  { %960 = shalt.err (!%p957_p3)
}
  0x27   :  { %s1021_s18 = smov [#allocation6]   ;;  %s961_s0 = scalar_lea.vmem %s54_s16, 16 }
  0x28   :  { %36 = dma.vmem_to_smem %s34_s13, 16, %s1021_s18, [#allocation5]  }
  0x29   :  { %p962_p4 = scmp.ne.s32.totalorder %s54_s16, %s961_s0  ;;  %p966_p5 = scmp.lt.s32.totalorder %s54_s16, %s54_s16 }
  0x2a   :  { %p967_p6 = scmp.lt.s32.totalorder %s961_s0, %s961_s0 }
  0x2c   :  { %p968_p7 = por %p967_p6, %p966_p5 }
  0x2e   :  { %p969_p8 = pnand %p968_p7, %p962_p4 }
  0x30   :  { %972 = shalt.err (!%p969_p8)
}
  0x31   :  { %s1022_s1 = smov [#allocation9]   ;;  %s63_s20 = sshll.u32 %s1837_s4, 4  ;;  %s64_s20 = int_to_ptr.vmem [resolvable:$true] %s63_s20 }
  0x32   :  { %56 = dma.vmem_to_smem %s54_s16, 16, %s1022_s1, [#allocation8]  }
  0x33   :  { %s973_s21 = scalar_lea.vmem %s64_s20, 16  ;;  %p978_p10 = scmp.lt.s32.totalorder %s64_s20, %s64_s20 }
  0x34   :  { %p974_p9 = scmp.ne.s32.totalorder %s64_s20, %s973_s21  ;;  %p979_p11 = scmp.lt.s32.totalorder %s973_s21, %s973_s21 }
  0x36   :  { %p980_p12 = por %p979_p11, %p978_p10 }
  0x38   :  { %p981_p13 = pnand %p980_p12, %p974_p9 }
  0x3a   :  { %984 = shalt.err (!%p981_p13)
}
  0x3b   :  { %s1023_s22 = smov [#allocation10]  }
  0x3c   :  { %66 = dma.vmem_to_smem %s64_s20, 16, %s1023_s22, [#allocation11]  }
  0x3d   :  { %1007 = dma.done.wait [#allocation3], 1024  }
  0x3e   :  { %1008 = vsyncadd [#allocation3], 4294966272 }
  0x3f   :  { %1009 = dma.done.wait [#allocation5], 16  }
  0x40   :  { %1010 = vsyncadd [#allocation5], 4294967280 }
  0x41   :  { %1011 = dma.done.wait [#allocation8], 32  }
  0x42   :  { %1012 = vsyncadd [#allocation8], 4294967264 }
  0x43   :  { %1013 = dma.done.wait [#allocation11], 16  }
  0x44   :  { %1014 = vsyncadd [#allocation11], 4294967280 }
  0x45   :  { %82 = sfence }
  0x46   :  { %s98_s4 = sld [smem:[#allocation6]]  ;;  %s828_s23 = sld [smem:[#allocation6 + $0xa]]  ;;  %v1082_v0 = vld [vmem:[#allocation2] sm:$0xff]  ;;  %v1084_v1 = vld [vmem:[#allocation2 + $0x8] sm:$0xff]  ;;  %v1086_v2 = vld [vmem:[#allocation2 + $0x10] sm:$0xff] }
  0x47   :  { %s829_s24 = sld [smem:[#allocation6 + $0x14]]  ;;  %s101_s25 = sld [smem:[#allocation7]]  ;;  %v1090_v3 = vld [vmem:[#allocation2 + $0x18] sm:$0xff]  ;;  %v1092_v4 = vld [vmem:[#allocation2 + $0x20] sm:$0xff] }
  0x48   :  { %s831_s26 = sld [smem:[#allocation6 + $0x1]]  ;;  %s832_s27 = sld [smem:[#allocation6 + $0xb]] }
  0x49   :  { %s833_s28 = sld [smem:[#allocation6 + $0x15]]  ;;  %s1088_s2 = sld [smem:[#allocation7 + $0x1]] }
  0x4a   :  { %s1120_s29 = sld [smem:[#allocation6 + $0x2]]  ;;  %s1128_s30 = sld [smem:[#allocation6 + $0xc]] }
  0x4b   :  { %s1130_s6 = sld [smem:[#allocation6 + $0x16]]  ;;  %s1132_s9 = sld [smem:[#allocation10]] }
  0x4c   :  { %v1094_v5 = vstv %s98_s4  ;;  %v1098_v7 = vstv %s828_s23  ;;  %s1138_s10 = sld [smem:[#allocation10 + $0x1]]  ;;  %s1140_s11 = sld [smem:[#allocation9]] }
  0x4d   :  { %v103_v6 = vmul.f32 %v1094_v5, %v1082_v0  ;;  %v1100_v8 = vstv %s829_s24  ;;  %v113_v9 = vmul.f32 %v1094_v5, %v1084_v1  ;;  %v105_v10 = vmul.f32 %v1098_v7, %v1084_v1  ;;  %s1154_s12 = sld [smem:[#allocation9 + $0x14]]  ;;  %s1162_s13 = sld [smem:[#allocation9 + $0x2]] }
  0x4e   :  { %v108_v11 = vmul.f32 %v1100_v8, %v1086_v2  ;;  %v114_v12 = vmul.f32 %v1098_v7, %v1086_v2  ;;  %v116_v13 = vmul.f32 %v1100_v8, %v1090_v3  ;;  %v121_v14 = vmul.f32 %v1094_v5, %v1086_v2  ;;  %s1164_s14 = sld [smem:[#allocation7 + $0x2]]  ;;  %s1169_s15 = sld [smem:[#allocation6 + $0x3]] }
  0x4f   :  { %v122_v15 = vmul.f32 %v1098_v7, %v1090_v3  ;;  %v124_v16 = vmul.f32 %v1100_v8, %v1092_v4  ;;  %v106_v17 = vadd.f32 %v105_v10, %v103_v6  ;;  %v1118_v18 = vstv %s101_s25  ;;  %s1171_s16 = sld [smem:[#allocation9 + $0x16]]  ;;  %s1186_s17 = sld [smem:[#allocation6 + $0xd]] }
  0x50   :  { %v115_v19 = vadd.f32 %v114_v12, %v113_v9  ;;  %v1122_v21 = vstv %s831_s26  ;;  %v1124_v22 = vstv %s832_s27  ;;  %v1126_v23 = vstv %s833_s28  ;;  %s1188_s18 = sld [smem:[#allocation6 + $0x17]]  ;;  %s1199_s0 = sld [smem:[#allocation7 + $0x3]] }
  0x51   :  { %v123_v20 = vadd.f32 %v122_v15, %v121_v14  ;;  %v109_v24 = vadd.f32 %v108_v11, %v106_v17  ;;  %v142_v26 = vmul.f32 %v1122_v21, %v1082_v0  ;;  %v144_v27 = vmul.f32 %v1124_v22, %v1084_v1  ;;  %s1222_s1 = sld [smem:[#allocation6 + $0x4]]  ;;  %s1224_s3 = sld [smem:[#allocation6 + $0xe]] }
  0x52   :  { %v117_v25 = vadd.f32 %v116_v13, %v115_v19  ;;  %v147_v29 = vmul.f32 %v1126_v23, %v1086_v2  ;;  %v1145_v30 = vstv %s1088_s2  ;;  %v152_v31 = vmul.f32 %v1122_v21, %v1084_v1  ;;  %s1227_s19 = sld [smem:[#allocation9 + $0x4]]  ;;  %s1236_s20 = sld [smem:[#allocation9 + $0x18]] }
  0x53   :  { %v125_v28 = vadd.f32 %v124_v16, %v123_v20  ;;  %v111_v32 = vadd.f32 %v1118_v18, %v109_v24  ;;  %v145_v34 = vadd.f32 %v144_v27, %v142_v26  ;;  %v153_v35 = vmul.f32 %v1124_v22, %v1086_v2  ;;  %s1240_s21 = sld [smem:[#allocation6 + $0x18]]  ;;  %s1250_s22 = sld [smem:[#allocation7 + $0x4]] }
  0x54   :  { %v118_v33 = vadd.f32 %v117_v25, %v1118_v18  ;;  %v155_v37 = vmul.f32 %v1126_v23, %v1090_v3  ;;  %v160_v38 = vmul.f32 %v1122_v21, %v1086_v2  ;;  %v161_v39 = vmul.f32 %v1124_v22, %v1090_v3  ;;  %s1262_s4 = sld [smem:[#allocation9 + $0x6]]  ;;  %s1271_s23 = sld [smem:[#allocation6 + $0x5]] }
  0x55   :  { %v126_v36 = vadd.f32 %v125_v28, %v1118_v18  ;;  %v112_v40 = vmax.f32 %v111_v32, 0.0  ;;  %v148_v42 = vadd.f32 %v147_v29, %v145_v34  ;;  %v154_v43 = vadd.f32 %v153_v35, %v152_v31  ;;  %s1273_s24 = sld [smem:[#allocation6 + $0xf]]  ;;  %s1275_s25 = sld [smem:[#allocation9 + $0x1a]] }
  0x56   :  { %v119_v41 = vmax.f32 %v118_v33, 0.0  ;;  %v162_v45 = vadd.f32 %v161_v39, %v160_v38  ;;  %v163_v46 = vmul.f32 %v1126_v23, %v1092_v4  ;;  %v1174_v51 = vstv %s1120_s29  ;;  %s1286_s26 = sld [smem:[#allocation6 + $0x19]]  ;;  %s1299_s27 = sld [smem:[#allocation7 + $0x5]] }
  0x57   :  { %v127_v44 = vmax.f32 %v126_v36, 0.0  ;;  %v150_v48 = vadd.f32 %v1145_v30, %v148_v42  ;;  %v156_v49 = vadd.f32 %v155_v37, %v154_v43  ;;  %v1177_v52 = vstv %s1128_s30  ;;  %s1310_s28 = sld [smem:[#allocation9 + $0x8]]  ;;  %s1319_s2 = sld [smem:[#allocation6 + $0x6]] }
  0x58   :  { %v120_v47 = vmax.f32 %v112_v40, %v119_v41  ;;  %v164_v50 = vadd.f32 %v163_v46, %v162_v45  ;;  %v1180_v53 = vstv %s1130_s6  ;;  %v84_v54 = vstv %s1132_s9  ;;  %s1324_s29 = sld [smem:[#allocation6 + $0x10]]  ;;  %s1331_s30 = sld [smem:[#allocation6 + $0x1a]] }
  0x59   :  { %v157_v56 = vadd.f32 %v156_v49, %v1145_v30  ;;  %v181_v57 = vmul.f32 %v1174_v51, %v1082_v0  ;;  %v87_v58 = vstv %s1138_s10  ;;  %v130_v59 = vstv %s1140_s11  ;;  %s1334_s6 = sld [smem:[#allocation9 + $0x1c]]  ;;  %s1348_s9 = sld [smem:[#allocation7 + $0x6]] }
  0x5a   :  { %v128_v55 = vmax.f32 %v120_v47, %v127_v44  ;;  %v183_v60 = vmul.f32 %v1177_v52, %v1084_v1  ;;  %v186_v61 = vmul.f32 %v1180_v53, %v1086_v2  ;;  %v151_v62 = vmax.f32 %v150_v48, 0.0  ;;  %s1358_s10 = sld [smem:[#allocation9 + $0xa]]  ;;  %s1363_s11 = sld [smem:[#allocation6 + $0x7]] }
  0x5b   :  { %v158_v63 = vmax.f32 %v157_v56, 0.0  ;;  %v165_v6 = vadd.f32 %v164_v50, %v1145_v30  ;;  %v191_v9 = vmul.f32 %v1174_v51, %v1084_v1  ;;  %v134_v10 = vstv %s1154_s12  ;;  %s1365_s12 = sld [smem:[#allocation9 + $0x1e]] }
  0x5c   :  { %v184_v11 = vadd.f32 %v183_v60, %v181_v57  ;;  %v192_v12 = vmul.f32 %v1177_v52, %v1086_v2  ;;  %v194_v13 = vmul.f32 %v1180_v53, %v1090_v3  ;;  %v131_v14 = vmul.f32 %v130_v59, %v128_v55 }
  0x5d   :  { %v169_v15 = vstv %s1162_s13  ;;  %v1208_v16 = vstv %s1164_s14  ;;  %v199_v17 = vmul.f32 %v1174_v51, %v1086_v2  ;;  %v200_v24 = vmul.f32 %v1177_v52, %v1090_v3  ;;  %s1378_s13 = sld [smem:[#allocation6 + $0x11]]  ;;  %s1380_s14 = sld [smem:[#allocation6 + $0x1b]] }
  0x5e   :  { %v187_v19 = vadd.f32 %v186_v61, %v184_v11  ;;  %v193_v20 = vadd.f32 %v192_v12, %v191_v9  ;;  %v202_v25 = vmul.f32 %v1180_v53, %v1092_v4  ;;  %v135_v26 = vmul.f32 %v134_v10, %v128_v55 }
  0x5f   :  { %v159_v27 = vmax.f32 %v151_v62, %v158_v63  ;;  %v166_v28 = vmax.f32 %v165_v6, 0.0  ;;  %v1217_v29 = vstv %s1169_s15  ;;  %v201_v33 = vadd.f32 %v200_v24, %v199_v17  ;;  %s1393_s15 = sld [smem:[#allocation7 + $0x7]] }
  0x60   :  { %v189_v31 = vadd.f32 %v1208_v16, %v187_v19  ;;  %v195_v32 = vadd.f32 %v194_v13, %v193_v20  ;;  %v220_v34 = vmul.f32 %v1217_v29, %v1082_v0  ;;  %v132_v35 = vadd.f32 %v131_v14, %v84_v54 }
  0x61   :  { %v173_v36 = vstv %s1171_s16  ;;  %v1230_v37 = vstv %s1186_s17  ;;  %v1233_v38 = vstv %s1188_s18  ;;  %v203_v41 = vadd.f32 %v202_v25, %v201_v33  ;;  %s1409_s16 = sld [smem:[#allocation6 + $0x8]]  ;;  %s1411_s17 = sld [smem:[#allocation6 + $0x12]] }
  0x62   :  { %v190_v39 = vmax.f32 %v189_v31, 0.0  ;;  %v196_v40 = vadd.f32 %v195_v32, %v1208_v16  ;;  %v222_v42 = vmul.f32 %v1230_v37, %v1084_v1  ;;  %v136_v43 = vadd.f32 %v135_v26, %v87_v58  ;;  %s1413_s18 = sld [smem:[#allocation9 + $0xc]] }
  0x63   :  { %v167_v44 = vmax.f32 %v159_v27, %v166_v28  ;;  %v225_v45 = vmul.f32 %v1233_v38, %v1086_v2  ;;  %v1245_v46 = vstv %s1199_s0  ;;  %v204_v48 = vadd.f32 %v203_v41, %v1208_v16  ;;  %s1424_s0 = sld [smem:[#allocation9 + $0x20]] }
  0x64   :  { %v197_v47 = vmax.f32 %v196_v40, 0.0  ;;  %v223_v49 = vadd.f32 %v222_v42, %v220_v34  ;;  %v230_v50 = vmul.f32 %v1217_v29, %v1084_v1  ;;  %v231_v54 = vmul.f32 %v1230_v37, %v1086_v2 }
  0x65   :  { %v233_v55 = vmul.f32 %v1233_v38, %v1090_v3  ;;  %v238_v56 = vmul.f32 %v1217_v29, %v1086_v2  ;;  %v239_v57 = vmul.f32 %v1230_v37, %v1090_v3  ;;  %v205_v59 = vmax.f32 %v204_v48, 0.0 }
  0x66   :  { %v198_v58 = vmax.f32 %v190_v39, %v197_v47  ;;  %v226_v60 = vadd.f32 %v225_v45, %v223_v49  ;;  %v241_v61 = vmul.f32 %v1233_v38, %v1092_v4  ;;  %v170_v62 = vmul.f32 %v169_v15, %v167_v44 }
  0x67   :  { %v174_v63 = vmul.f32 %v173_v36, %v167_v44  ;;  %v232_v6 = vadd.f32 %v231_v54, %v230_v50  ;;  %v240_v9 = vadd.f32 %v239_v57, %v238_v56  ;;  %v1266_v12 = vstv %s1222_s1  ;;  %s1426_s1 = sld [smem:[#allocation6 + $0x1c]] }
  0x68   :  { %v206_v10 = vmax.f32 %v198_v58, %v205_v59  ;;  %v228_v11 = vadd.f32 %v1245_v46, %v226_v60  ;;  %v1269_v13 = vstv %s1224_s3  ;;  %v259_v17 = vmul.f32 %v1266_v12, %v1082_v0  ;;  %s1440_s3 = sld [smem:[#allocation7 + $0x8]] }
  0x69   :  { %v234_v14 = vadd.f32 %v233_v55, %v232_v6  ;;  %v242_v15 = vadd.f32 %v241_v61, %v240_v9  ;;  %v261_v19 = vmul.f32 %v1269_v13, %v1084_v1  ;;  %v208_v20 = vstv %s1227_s19  ;;  %s1450_s19 = sld [smem:[#allocation9 + $0xe]] }
  0x6a   :  { %v212_v24 = vstv %s1236_s20  ;;  %v229_v25 = vmax.f32 %v228_v11, 0.0  ;;  %v1284_v26 = vstv %s1240_s21  ;;  %v171_v33 = vadd.f32 %v170_v62, %v132_v35  ;;  %s1458_s20 = sld [smem:[#allocation6 + $0x9]]  ;;  %s1462_s21 = sld [smem:[#allocation9 + $0x22]] }
  0x6b   :  { %v235_v27 = vadd.f32 %v234_v14, %v1245_v46  ;;  %v243_v28 = vadd.f32 %v242_v15, %v1245_v46  ;;  %v262_v31 = vadd.f32 %v261_v19, %v259_v17  ;;  %v264_v32 = vmul.f32 %v1284_v26, %v1086_v2 }
  0x6c   :  { %v175_v34 = vadd.f32 %v174_v63, %v136_v43  ;;  %v1293_v36 = vstv %s1250_s22  ;;  %v269_v39 = vmul.f32 %v1266_v12, %v1084_v1  ;;  %v209_v40 = vmul.f32 %v208_v20, %v206_v10  ;;  %s1468_s22 = sld [smem:[#allocation6 + $0x13]] }
  0x6d   :  { %v236_v41 = vmax.f32 %v235_v27, 0.0  ;;  %v265_v42 = vadd.f32 %v264_v32, %v262_v31  ;;  %v270_v44 = vmul.f32 %v1269_v13, %v1086_v2  ;;  %v272_v35 = vmul.f32 %v1284_v26, %v1090_v3 }
  0x6e   :  { %v277_v43 = vmul.f32 %v1266_v12, %v1086_v2  ;;  %v278_v45 = vmul.f32 %v1269_v13, %v1090_v3  ;;  %v280_v47 = vmul.f32 %v1284_v26, %v1092_v4  ;;  %v244_v49 = vmax.f32 %v243_v28, 0.0 }
  0x6f   :  { %v237_v48 = vmax.f32 %v229_v25, %v236_v41  ;;  %v267_v50 = vadd.f32 %v1293_v36, %v265_v42  ;;  %v271_v54 = vadd.f32 %v270_v44, %v269_v39  ;;  %v247_v55 = vstv %s1262_s4  ;;  %s1477_s4 = sld [smem:[#allocation6 + $0x1d]] }
  0x70   :  { %v279_v56 = vadd.f32 %v278_v45, %v277_v43  ;;  %v1314_v57 = vstv %s1271_s23  ;;  %v1317_v58 = vstv %s1273_s24  ;;  %v213_v59 = vmul.f32 %v212_v24, %v206_v10  ;;  %s1483_s23 = sld [smem:[#allocation9 + $0x10]]  ;;  %s882_s24 = sld [smem:[#allocation7 + $0x9]] }
  0x71   :  { %v251_v60 = vstv %s1275_s25  ;;  %v273_v61 = vadd.f32 %v272_v35, %v271_v54  ;;  %v298_v62 = vmul.f32 %v1314_v57, %v1082_v0  ;;  %v210_v63 = vadd.f32 %v209_v40, %v171_v33  ;;  %s1511_s25 = sld [smem:[#allocation9 + $0x24]] }
  0x72   :  { %v281_v6 = vadd.f32 %v280_v47, %v279_v56  ;;  %v300_v9 = vmul.f32 %v1317_v58, %v1084_v1  ;;  %v1329_v11 = vstv %s1286_s26  ;;  %v245_v14 = vmax.f32 %v237_v48, %v244_v49  ;;  %s1534_s26 = sld [smem:[#allocation9 + $0x12]] }
  0x73   :  { %v268_v15 = vmax.f32 %v267_v50, 0.0  ;;  %v274_v10 = vadd.f32 %v273_v61, %v1293_v36  ;;  %v303_v17 = vmul.f32 %v1329_v11, %v1086_v2  ;;  %v308_v24 = vmul.f32 %v1314_v57, %v1084_v1 }
  0x74   :  { %v282_v19 = vadd.f32 %v281_v6, %v1293_v36  ;;  %v301_v20 = vadd.f32 %v300_v9, %v298_v62  ;;  %v309_v25 = vmul.f32 %v1317_v58, %v1086_v2  ;;  %v214_v27 = vadd.f32 %v213_v59, %v175_v34 }
  0x75   :  { %v275_v28 = vmax.f32 %v274_v10, 0.0  ;;  %v1344_v31 = vstv %s1299_s27  ;;  %v311_v32 = vmul.f32 %v1329_v11, %v1090_v3  ;;  %v316_v41 = vmul.f32 %v1314_v57, %v1086_v2  ;;  %s1553_s27 = sld [smem:[#allocation9 + $0x26]] }
  0x76   :  { %v283_v33 = vmax.f32 %v282_v19, 0.0  ;;  %v304_v39 = vadd.f32 %v303_v17, %v301_v20  ;;  %v310_v40 = vadd.f32 %v309_v25, %v308_v24  ;;  %v286_v44 = vstv %s1310_s28  ;;  %s1562_s28 = sld [smem:[#allocation9 + $0x1]] }
  0x77   :  { %v276_v42 = vmax.f32 %v268_v15, %v275_v28  ;;  %v317_v34 = vmul.f32 %v1317_v58, %v1090_v3  ;;  %v319_v35 = vmul.f32 %v1329_v11, %v1092_v4  ;;  %v248_v43 = vmul.f32 %v247_v55, %v245_v14 }
  0x78   :  { %v306_v45 = vadd.f32 %v1344_v31, %v304_v39  ;;  %v312_v47 = vadd.f32 %v311_v32, %v310_v40  ;;  %v1361_v48 = vstv %s1319_s2  ;;  %v1370_v56 = vstv %s1324_s29  ;;  %s1579_s2 = sld [smem:[#allocation9 + $0x15]]  ;;  %s1594_s29 = sld [smem:[#allocation9 + $0x3]] }
  0x79   :  { %v284_v49 = vmax.f32 %v276_v42, %v283_v33  ;;  %v318_v50 = vadd.f32 %v317_v34, %v316_v41  ;;  %v337_v54 = vmul.f32 %v1361_v48, %v1082_v0  ;;  %v339_v61 = vmul.f32 %v1370_v56, %v1084_v1 }
  0x7a   :  { %v307_v55 = vmax.f32 %v306_v45, 0.0  ;;  %v313_v59 = vadd.f32 %v312_v47, %v1344_v31  ;;  %v1376_v62 = vstv %s1331_s30  ;;  %v252_v6 = vmul.f32 %v251_v60, %v245_v14  ;;  %s1597_s30 = sld [smem:[#allocation9 + $0x17]] }
  0x7b   :  { %v290_v9 = vstv %s1334_s6  ;;  %v320_v15 = vadd.f32 %v319_v35, %v318_v50  ;;  %v342_v10 = vmul.f32 %v1376_v62, %v1086_v2  ;;  %v249_v17 = vadd.f32 %v248_v43, %v210_v63  ;;  %s1616_s6 = sld [smem:[#allocation9 + $0x5]] }
  0x7c   :  { %v314_v19 = vmax.f32 %v313_v59, 0.0  ;;  %v340_v20 = vadd.f32 %v339_v61, %v337_v54  ;;  %v347_v24 = vmul.f32 %v1361_v48, %v1084_v1  ;;  %v287_v25 = vmul.f32 %v286_v44, %v284_v49 }
  0x7d   :  { %v321_v28 = vadd.f32 %v320_v15, %v1344_v31  ;;  %v1389_v32 = vstv %s1348_s9  ;;  %v348_v60 = vmul.f32 %v1370_v56, %v1086_v2  ;;  %v350_v33 = vmul.f32 %v1376_v62, %v1090_v3  ;;  %s1634_s9 = sld [smem:[#allocation9 + $0x19]] }
  0x7e   :  { %v315_v14 = vmax.f32 %v307_v55, %v314_v19  ;;  %v343_v63 = vadd.f32 %v342_v10, %v340_v20  ;;  %v355_v39 = vmul.f32 %v1361_v48, %v1086_v2  ;;  %v356_v42 = vmul.f32 %v1370_v56, %v1090_v3 }
  0x7f   :  { %v322_v40 = vmax.f32 %v321_v28, 0.0  ;;  %v349_v41 = vadd.f32 %v348_v60, %v347_v24  ;;  %v358_v44 = vmul.f32 %v1376_v62, %v1092_v4  ;;  %v253_v34 = vadd.f32 %v252_v6, %v214_v27 }
  0x80   :  { %v325_v35 = vstv %s1358_s10  ;;  %v345_v43 = vadd.f32 %v1389_v32, %v343_v63  ;;  %v1406_v45 = vstv %s1363_s11  ;;  %v291_v47 = vmul.f32 %v290_v9, %v284_v49  ;;  %s1644_s10 = sld [smem:[#allocation9 + $0x7]]  ;;  %s1662_s11 = sld [smem:[#allocation9 + $0x1b]] }
  0x81   :  { %v329_v50 = vstv %s1365_s12  ;;  %v351_v54 = vadd.f32 %v350_v33, %v349_v41  ;;  %v357_v55 = vadd.f32 %v356_v42, %v355_v39  ;;  %v288_v59 = vadd.f32 %v287_v25, %v249_v17  ;;  %s1675_s12 = sld [smem:[#allocation9 + $0x9]] }
  0x82   :  { %v376_v61 = vmul.f32 %v1406_v45, %v1082_v0  ;;  %v1418_v27 = vstv %s1378_s13  ;;  %v1421_v6 = vstv %s1380_s14  ;;  %v323_v15 = vmax.f32 %v315_v14, %v322_v40  ;;  %s1679_s13 = sld [smem:[#allocation9 + $0x1d]]  ;;  %s1701_s14 = sld [smem:[#allocation9 + $0xb]] }
  0x83   :  { %v346_v49 = vmax.f32 %v345_v43, 0.0  ;;  %v352_v9 = vadd.f32 %v351_v54, %v1389_v32  ;;  %v359_v10 = vadd.f32 %v358_v44, %v357_v55  ;;  %v378_v17 = vmul.f32 %v1418_v27, %v1084_v1 }
  0x84   :  { %v381_v19 = vmul.f32 %v1421_v6, %v1086_v2  ;;  %v386_v20 = vmul.f32 %v1406_v45, %v1084_v1  ;;  %v387_v24 = vmul.f32 %v1418_v27, %v1086_v2  ;;  %v292_v25 = vadd.f32 %v291_v47, %v253_v34 }
  0x85   :  { %v353_v28 = vmax.f32 %v352_v9, 0.0  ;;  %v360_v60 = vadd.f32 %v359_v10, %v1389_v32  ;;  %v1438_v14 = vstv %s1393_s15  ;;  %v379_v63 = vadd.f32 %v378_v17, %v376_v61  ;;  %s1717_s15 = sld [smem:[#allocation9 + $0x1f]] }
  0x86   :  { %1855 = vst [vmem:[#allocation18_spill] sm:$0xff] %v1438_v14  ;;  %v388_v33 = vadd.f32 %v387_v24, %v386_v20  ;;  %v389_v39 = vmul.f32 %v1421_v6, %v1090_v3  ;;  %v394_v40 = vmul.f32 %v1406_v45, %v1086_v2  ;;  %v395_v44 = vmul.f32 %v1418_v27, %v1090_v3 }
  0x87   :  { %v354_v41 = vmax.f32 %v346_v49, %v353_v28  ;;  %v361_v42 = vmax.f32 %v360_v60, 0.0  ;;  %v397_v34 = vmul.f32 %v1421_v6, %v1092_v4  ;;  %v326_v43 = vmul.f32 %v325_v35, %v323_v15 }
  0x88   :  { %v330_v47 = vmul.f32 %v329_v50, %v323_v15  ;;  %v382_v54 = vadd.f32 %v381_v19, %v379_v63  ;;  %v390_v55 = vadd.f32 %v389_v39, %v388_v33  ;;  %v396_v9 = vadd.f32 %v395_v44, %v394_v40 }
  0x89   :  { %v362_v61 = vmax.f32 %v354_v41, %v361_v42  ;;  %v1453_v10 = vstv %s1409_s16  ;;  %v1456_v49 = vstv %s1411_s17  ;;  %v364_v19 = vstv %s1413_s18  ;;  %s1733_s16 = sld [smem:[#allocation9 + $0xd]]  ;;  %s1745_s17 = sld [smem:[#allocation9 + $0x21]] }
  0x8a   :  { %1856 = vst [vmem:[#allocation19_spill] sm:$0xff] %v1453_v10  ;;  %1857 = vst [vmem:[#allocation20_spill] sm:$0xff] %v1456_v49  ;;  %v384_v17 = vadd.f32 %v1438_v14, %v382_v54  ;;  %v391_v35 = vadd.f32 %v390_v55, %v1438_v14  ;;  %v415_v50 = vmul.f32 %v1453_v10, %v1082_v0  ;;  %v368_v20 = vstv %s1424_s0  ;;  %s1759_s18 = sld [smem:[#allocation9 + $0xf]]  ;;  %s1764_s0 = sld [smem:[#allocation9 + $0x23]] }
  0x8b   :  { %v417_v15 = vmul.f32 %v1456_v49, %v1084_v1  ;;  %v398_v24 = vadd.f32 %v397_v34, %v396_v9  ;;  %v1473_v28 = vstv %s1426_s1  ;;  %v327_v60 = vadd.f32 %v326_v43, %v288_v59  ;;  %s1790_s1 = sld [smem:[#allocation9 + $0x11]] }
  0x8c   :  { %1858 = vst [vmem:[#allocation21_spill] sm:$0xff] %v1473_v28  ;;  %v331_v63 = vadd.f32 %v330_v47, %v292_v25  ;;  %v420_v39 = vmul.f32 %v1473_v28, %v1086_v2  ;;  %v385_v40 = vmax.f32 %v384_v17, 0.0  ;;  %v392_v41 = vmax.f32 %v391_v35, 0.0 }
  0x8d   :  { %v418_v33 = vadd.f32 %v417_v15, %v415_v50  ;;  %v399_v42 = vadd.f32 %v398_v24, %v1438_v14  ;;  %v1481_v44 = vstv %s1440_s3  ;;  %v365_v34 = vmul.f32 %v364_v19, %v362_v61  ;;  %s1792_s3 = sld [smem:[#allocation9 + $0x25]] }
  0x8e   :  { %1859 = vst [vmem:[#allocation22_spill] sm:$0xff] %v1481_v44  ;;  %v425_v59 = vmul.f32 %v1453_v10, %v1084_v1  ;;  %v426_v25 = vmul.f32 %v1456_v49, %v1086_v2  ;;  %v369_v43 = vmul.f32 %v368_v20, %v362_v61  ;;  %v428_v47 = vmul.f32 %v1473_v28, %v1090_v3 }
  0x8f   :  { %v421_v54 = vadd.f32 %v420_v39, %v418_v33  ;;  %v433_v55 = vmul.f32 %v1453_v10, %v1086_v2  ;;  %v434_v9 = vmul.f32 %v1456_v49, %v1090_v3  ;;  %v403_v17 = vstv %s1450_s19  ;;  %s903_s19 = sld [smem:[#allocation9 + $0x13]] }
  0x90   :  { %v427_v50 = vadd.f32 %v426_v25, %v425_v59  ;;  %v436_v15 = vmul.f32 %v1473_v28, %v1092_v4  ;;  %v393_v61 = vmax.f32 %v385_v40, %v392_v41  ;;  %v400_v19 = vmax.f32 %v399_v42, 0.0 }
  0x91   :  { %v423_v35 = vadd.f32 %v1481_v44, %v421_v54  ;;  %v435_v20 = vadd.f32 %v434_v9, %v433_v55  ;;  %v1500_v24 = vstv %s1458_s20  ;;  %v407_v33 = vstv %s1462_s21  ;;  %s904_s20 = sld [smem:[#allocation9 + $0x27]]  ;;  %s1024_s21 = smov [#allocation12]  }
  0x92   :  { %1860 = vst [vmem:[#allocation23_spill] sm:$0xff] %v1500_v24  ;;  %v429_v39 = vadd.f32 %v428_v47, %v427_v50  ;;  %v454_v49 = vmul.f32 %v1500_v24, %v1082_v0  ;;  %v1506_v10 = vstv %s1468_s22  ;;  %v366_v14 = vadd.f32 %v365_v34, %v327_v60  ;;  %s812_s22 = sshll.u32 %s1024_s21, 4  ;;  %s813_s22 = int_to_ptr.vmem [resolvable:$true] %s812_s22 }
  0x93   :  { %1861 = vst [vmem:[#allocation24_spill] sm:$0xff] %v1506_v10  ;;  %v370_v54 = vadd.f32 %v369_v43, %v331_v63  ;;  %v437_v59 = vadd.f32 %v436_v15, %v435_v20  ;;  %v456_v25 = vmul.f32 %v1506_v10, %v1084_v1  ;;  %v424_v28 = vmax.f32 %v423_v35, 0.0  ;;  %p990_p1 = scmp.lt.s32.totalorder %s813_s22, %s813_s22 }
  0x94   :  { %v430_v40 = vadd.f32 %v429_v39, %v1481_v44  ;;  %v1514_v41 = vstv %s1477_s4  ;;  %v464_v42 = vmul.f32 %v1500_v24, %v1084_v1  ;;  %v401_v47 = vmax.f32 %v393_v61, %v400_v19  ;;  %v1536_v39 = vld [vmem:[#allocation2 + $0x28] sm:$0xff]  ;;  %s985_s4 = scalar_lea.vmem %s813_s22, 256 }
  0x95   :  { %1862 = vst [vmem:[#allocation25_spill] sm:$0xff] %v1514_v41  ;;  %v438_v0 = vadd.f32 %v437_v59, %v1481_v44  ;;  %v442_v55 = vstv %s1483_s23  ;;  %v457_v60 = vadd.f32 %v456_v25, %v454_v49  ;;  %v459_v34 = vmul.f32 %v1514_v41, %v1086_v2  ;;  %v1543_v44 = vld [vmem:[#allocation2 + $0x30] sm:$0xff]  ;;  %p986_p0 = scmp.ne.s32.totalorder %s813_s22, %s985_s4  ;;  %p991_p2 = scmp.lt.s32.totalorder %s985_s4, %s985_s4 }
  0x96   :  { %v431_v63 = vmax.f32 %v430_v40, 0.0  ;;  %v465_v43 = vmul.f32 %v1506_v10, %v1086_v2  ;;  %v467_v9 = vmul.f32 %v1514_v41, %v1090_v3  ;;  %v1526_v35 = vstv %s882_s24 }
  0x97   :  { %v472_v1 = vmul.f32 %v1500_v24, %v1086_v2  ;;  %v473_v50 = vmul.f32 %v1506_v10, %v1090_v3  ;;  %v475_v49 = vmul.f32 %v1514_v41, %v1092_v4  ;;  %v439_v61 = vmax.f32 %v438_v0, 0.0  ;;  %p992_p3 = por %p991_p2, %p990_p1 }
  0x98   :  { %v432_v15 = vmax.f32 %v424_v28, %v431_v63  ;;  %v460_v19 = vadd.f32 %v459_v34, %v457_v60  ;;  %v466_v20 = vadd.f32 %v465_v43, %v464_v42  ;;  %v404_v59 = vmul.f32 %v403_v17, %v401_v47 }
  0x99   :  { %v474_v25 = vadd.f32 %v473_v50, %v472_v1  ;;  %v494_v2 = vmul.f32 %v1094_v5, %v1090_v3  ;;  %v495_v40 = vmul.f32 %v1098_v7, %v1092_v4  ;;  %v408_v10 = vmul.f32 %v407_v33, %v401_v47  ;;  %p993_p4 = pnand %p992_p3, %p986_p0 }
  0x9a   :  { %v462_v41 = vadd.f32 %v1526_v35, %v460_v19  ;;  %v468_v24 = vadd.f32 %v467_v9, %v466_v20  ;;  %v497_v28 = vmul.f32 %v1536_v39, %v1100_v8  ;;  %v501_v17 = vmul.f32 %v1094_v5, %v1092_v4  ;;  %v1556_v9 = vld [vmem:[#allocation2 + $0x38] sm:$0xff] }
  0x9b   :  { %v476_v42 = vadd.f32 %v475_v49, %v474_v25  ;;  %v496_v0 = vadd.f32 %v495_v40, %v494_v2  ;;  %v502_v60 = vmul.f32 %v1536_v39, %v1098_v7  ;;  %v440_v63 = vmax.f32 %v432_v15, %v439_v61 }
  0x9c   :  { %v446_v34 = vstv %s1511_s25  ;;  %v463_v33 = vmax.f32 %v462_v41, 0.0  ;;  %v469_v47 = vadd.f32 %v468_v24, %v1526_v35  ;;  %v504_v49 = vmul.f32 %v1543_v44, %v1100_v8 }
  0x9d   :  { %v477_v43 = vadd.f32 %v476_v42, %v1526_v35  ;;  %v498_v1 = vadd.f32 %v497_v28, %v496_v0  ;;  %v503_v50 = vadd.f32 %v502_v60, %v501_v17  ;;  %v405_v19 = vadd.f32 %v404_v59, %v366_v14 }
  0x9e   :  { %v409_v20 = vadd.f32 %v408_v10, %v370_v54  ;;  %v470_v25 = vmax.f32 %v469_v47, 0.0  ;;  %v509_v15 = vmul.f32 %v1536_v39, %v1094_v5  ;;  %v481_v24 = vstv %s1534_s26 }
  0x9f   :  { %v499_v41 = vadd.f32 %v498_v1, %v1118_v18  ;;  %v505_v61 = vadd.f32 %v504_v49, %v503_v50  ;;  %v510_v2 = vmul.f32 %v1543_v44, %v1098_v7  ;;  %v443_v40 = vmul.f32 %v442_v55, %v440_v63 }
  0xa0   :  { %v471_v28 = vmax.f32 %v463_v33, %v470_v25  ;;  %v478_v42 = vmax.f32 %v477_v43, 0.0  ;;  %v512_v14 = vmul.f32 %v1556_v9, %v1100_v8  ;;  %v447_v10 = vmul.f32 %v446_v34, %v440_v63 }
  0xa1   :  { %v506_v54 = vadd.f32 %v505_v61, %v1118_v18  ;;  %v511_v5 = vadd.f32 %v510_v2, %v509_v15  ;;  %v525_v59 = vmul.f32 %v1122_v21, %v1090_v3  ;;  %v500_v0 = vmax.f32 %v499_v41, 0.0 }
  0xa2   :  { %v526_v17 = vmul.f32 %v1124_v22, %v1092_v4  ;;  %v528_v7 = vmul.f32 %v1536_v39, %v1126_v23  ;;  %v532_v55 = vmul.f32 %v1122_v21, %v1092_v4  ;;  %v533_v63 = vmul.f32 %v1536_v39, %v1124_v22 }
  0xa3   :  { %v507_v60 = vmax.f32 %v506_v54, 0.0  ;;  %v513_v8 = vadd.f32 %v512_v14, %v511_v5  ;;  %v535_v34 = vmul.f32 %v1543_v44, %v1126_v23  ;;  %v479_v33 = vmax.f32 %v471_v28, %v478_v42 }
  0xa4   :  { %v485_v47 = vstv %s1553_s27  ;;  %v527_v43 = vadd.f32 %v526_v17, %v525_v59  ;;  %v540_v1 = vmul.f32 %v1536_v39, %v1122_v21  ;;  %v444_v50 = vadd.f32 %v443_v40, %v405_v19 }
  0xa5   :  { %v514_v49 = vadd.f32 %v513_v8, %v1118_v18  ;;  %v534_v25 = vadd.f32 %v533_v63, %v532_v55  ;;  %v541_v15 = vmul.f32 %v1543_v44, %v1124_v22  ;;  %v448_v41 = vadd.f32 %v447_v10, %v409_v20 }
  0xa6   :  { %v518_v61 = vstv %s1562_s28  ;;  %v529_v2 = vadd.f32 %v528_v7, %v527_v43  ;;  %v543_v14 = vmul.f32 %v1556_v9, %v1126_v23  ;;  %v508_v54 = vmax.f32 %v500_v0, %v507_v60 }
  0xa7   :  { %v515_v28 = vmax.f32 %v514_v49, 0.0  ;;  %v536_v42 = vadd.f32 %v535_v34, %v534_v25  ;;  %v542_v5 = vadd.f32 %v541_v15, %v540_v1  ;;  %v482_v21 = vmul.f32 %v481_v24, %v479_v33 }
  0xa8   :  { %v530_v18 = vadd.f32 %v529_v2, %v1145_v30  ;;  %v556_v22 = vmul.f32 %v1174_v51, %v1090_v3  ;;  %v557_v19 = vmul.f32 %v1177_v52, %v1092_v4  ;;  %v486_v20 = vmul.f32 %v485_v47, %v479_v33 }
  0xa9   :  { %v537_v23 = vadd.f32 %v536_v42, %v1145_v30  ;;  %v544_v40 = vadd.f32 %v543_v14, %v542_v5  ;;  %v559_v10 = vmul.f32 %v1536_v39, %v1180_v53  ;;  %v563_v24 = vmul.f32 %v1174_v51, %v1092_v4 }
  0xaa   :  { %v531_v59 = vmax.f32 %v530_v18, 0.0  ;;  %v558_v0 = vadd.f32 %v557_v19, %v556_v22  ;;  %v564_v17 = vmul.f32 %v1536_v39, %v1177_v52  ;;  %v516_v7 = vmax.f32 %v508_v54, %v515_v28 }
  0xab   :  { %v522_v55 = vstv %s1579_s2  ;;  %v538_v60 = vmax.f32 %v537_v23, 0.0  ;;  %v545_v8 = vadd.f32 %v544_v40, %v1145_v30  ;;  %v566_v33 = vmul.f32 %v1543_v44, %v1180_v53 }
  0xac   :  { %v560_v63 = vadd.f32 %v559_v10, %v558_v0  ;;  %v565_v34 = vadd.f32 %v564_v17, %v563_v24  ;;  %v571_v47 = vmul.f32 %v1536_v39, %v1174_v51  ;;  %v483_v43 = vadd.f32 %v482_v21, %v444_v50 }
  0xad   :  { %v487_v1 = vadd.f32 %v486_v20, %v448_v41  ;;  %v539_v49 = vmax.f32 %v531_v59, %v538_v60  ;;  %v546_v25 = vmax.f32 %v545_v8, 0.0  ;;  %v572_v30 = vmul.f32 %v1543_v44, %v1177_v52 }
  0xae   :  { %v561_v15 = vadd.f32 %v560_v63, %v1208_v16  ;;  %v567_v2 = vadd.f32 %v566_v33, %v565_v34  ;;  %v574_v14 = vmul.f32 %v1556_v9, %v1180_v53  ;;  %v519_v54 = vmul.f32 %v518_v61, %v516_v7 }
  0xaf   :  { %v523_v28 = vmul.f32 %v522_v55, %v516_v7  ;;  %v549_v42 = vstv %s1594_s29  ;;  %v587_v51 = vmul.f32 %v1217_v29, %v1090_v3  ;;  %v553_v5 = vstv %s1597_s30 }
  0xb0   :  { %v568_v50 = vadd.f32 %v567_v2, %v1208_v16  ;;  %v573_v41 = vadd.f32 %v572_v30, %v571_v47  ;;  %v588_v21 = vmul.f32 %v1230_v37, %v1092_v4  ;;  %v547_v18 = vmax.f32 %v539_v49, %v546_v25 }
  0xb1   :  { %v562_v22 = vmax.f32 %v561_v15, 0.0  ;;  %v590_v52 = vmul.f32 %v1536_v39, %v1233_v38  ;;  %v594_v53 = vmul.f32 %v1217_v29, %v1092_v4  ;;  %v595_v23 = vmul.f32 %v1536_v39, %v1230_v37 }
  0xb2   :  { %v569_v61 = vmax.f32 %v568_v50, 0.0  ;;  %v575_v19 = vadd.f32 %v574_v14, %v573_v41  ;;  %v589_v20 = vadd.f32 %v588_v21, %v587_v51  ;;  %v520_v40 = vadd.f32 %v519_v54, %v483_v43 }
  0xb3   :  { %v524_v10 = vadd.f32 %v523_v28, %v487_v1  ;;  %v597_v59 = vmul.f32 %v1543_v44, %v1233_v38  ;;  %v602_v0 = vmul.f32 %v1536_v39, %v1217_v29  ;;  %v580_v17 = vstv %s1616_s6 }
  0xb4   :  { %v576_v24 = vadd.f32 %v575_v19, %v1208_v16  ;;  %v591_v7 = vadd.f32 %v590_v52, %v589_v20  ;;  %v596_v55 = vadd.f32 %v595_v23, %v594_v53  ;;  %v550_v60 = vmul.f32 %v549_v42, %v547_v18 }
  0xb5   :  { %v570_v8 = vmax.f32 %v562_v22, %v569_v61  ;;  %v603_v63 = vmul.f32 %v1543_v44, %v1230_v37  ;;  %v605_v34 = vmul.f32 %v1556_v9, %v1233_v38  ;;  %v618_v16 = vmul.f32 %v1266_v12, %v1090_v3 }
  0xb6   :  { %v577_v33 = vmax.f32 %v576_v24, 0.0  ;;  %v592_v47 = vadd.f32 %v591_v7, %v1245_v46  ;;  %v598_v43 = vadd.f32 %v597_v59, %v596_v55  ;;  %v619_v1 = vmul.f32 %v1269_v13, %v1092_v4 }
  0xb7   :  { %v604_v29 = vadd.f32 %v603_v63, %v602_v0  ;;  %v621_v49 = vmul.f32 %v1536_v39, %v1284_v26  ;;  %v625_v37 = vmul.f32 %v1266_v12, %v1092_v4  ;;  %v554_v25 = vmul.f32 %v553_v5, %v547_v18 }
  0xb8   :  { %v593_v38 = vmax.f32 %v592_v47, 0.0  ;;  %v599_v15 = vadd.f32 %v598_v43, %v1245_v46  ;;  %v626_v2 = vmul.f32 %v1536_v39, %v1269_v13  ;;  %v620_v3 = vadd.f32 %v619_v1, %v618_v16 }
  0xb9   :  { %v606_v30 = vadd.f32 %v605_v34, %v604_v29  ;;  %v628_v14 = vmul.f32 %v1543_v44, %v1284_v26  ;;  %v633_v54 = vmul.f32 %v1536_v39, %v1266_v12  ;;  %v578_v28 = vmax.f32 %v570_v8, %v577_v33 }
  0xba   :  { %v584_v4 = vstv %s1634_s9  ;;  %v600_v42 = vmax.f32 %v599_v15, 0.0  ;;  %v627_v51 = vadd.f32 %v626_v2, %v625_v37  ;;  %v622_v50 = vadd.f32 %v621_v49, %v620_v3 }
  0xbb   :  { %v607_v5 = vadd.f32 %v606_v30, %v1245_v46  ;;  %v634_v41 = vmul.f32 %v1543_v44, %v1269_v13  ;;  %v636_v21 = vmul.f32 %v1556_v9, %v1284_v26  ;;  %v551_v18 = vadd.f32 %v550_v60, %v520_v40  ;;  %v1681_v13 = vld [vmem:[#allocation2 + $0x18] sm:$0xff]  ;;  %v1685_v40 = vld [vmem:[#allocation2 + $0x20] sm:$0xff] }
  0xbc   :  { %v555_v22 = vadd.f32 %v554_v25, %v524_v10  ;;  %v611_v52 = vstv %s1644_s10  ;;  %v629_v53 = vadd.f32 %v628_v14, %v627_v51  ;;  %v601_v12 = vmax.f32 %v593_v38, %v600_v42 }
  0xbd   :  { %v608_v61 = vmax.f32 %v607_v5, 0.0  ;;  %v623_v19 = vadd.f32 %v622_v50, %v1293_v36  ;;  %v635_v20 = vadd.f32 %v634_v41, %v633_v54  ;;  %v581_v23 = vmul.f32 %v580_v17, %v578_v28 }
  0xbe   :  { %v630_v46 = vadd.f32 %v629_v53, %v1293_v36  ;;  %v649_v26 = vmul.f32 %v1681_v13, %v1314_v57  ;;  %v650_v10 = vmul.f32 %v1685_v40, %v1317_v58  ;;  %v585_v59 = vmul.f32 %v584_v4, %v578_v28 }
  0xbf   :  { %v624_v0 = vmax.f32 %v623_v19, 0.0  ;;  %v637_v24 = vadd.f32 %v636_v21, %v635_v20  ;;  %v652_v17 = vmul.f32 %v1536_v39, %v1329_v11  ;;  %v656_v60 = vmul.f32 %v1685_v40, %v1314_v57 }
  0xc0   :  { %v631_v7 = vmax.f32 %v630_v46, 0.0  ;;  %v651_v55 = vadd.f32 %v650_v10, %v649_v26  ;;  %v657_v8 = vmul.f32 %v1536_v39, %v1317_v58  ;;  %v609_v63 = vmax.f32 %v601_v12, %v608_v61 }
  0xc1   :  { %v615_v34 = vstv %s1662_s11  ;;  %v638_v33 = vadd.f32 %v637_v24, %v1293_v36  ;;  %v659_v47 = vmul.f32 %v1543_v44, %v1329_v11  ;;  %v582_v43 = vadd.f32 %v581_v23, %v551_v18 }
  0xc2   :  { %v653_v16 = vadd.f32 %v652_v17, %v651_v55  ;;  %v658_v29 = vadd.f32 %v657_v8, %v656_v60  ;;  %v664_v1 = vmul.f32 %v1536_v39, %v1314_v57  ;;  %v586_v49 = vadd.f32 %v585_v59, %v555_v22 }
  0xc3   :  { %v632_v37 = vmax.f32 %v624_v0, %v631_v7  ;;  %v639_v25 = vmax.f32 %v638_v33, 0.0  ;;  %v665_v38 = vmul.f32 %v1543_v44, %v1317_v58  ;;  %v642_v15 = vstv %s1675_s12 }
  0xc4   :  { %v654_v36 = vadd.f32 %v653_v16, %v1344_v31  ;;  %v660_v2 = vadd.f32 %v659_v47, %v658_v29  ;;  %v667_v30 = vmul.f32 %v1556_v9, %v1329_v11  ;;  %v612_v3 = vmul.f32 %v611_v52, %v609_v63 }
  0xc5   :  { %v616_v14 = vmul.f32 %v615_v34, %v609_v63  ;;  %v666_v54 = vadd.f32 %v665_v38, %v664_v1  ;;  %v680_v57 = vmul.f32 %v1681_v13, %v1361_v48  ;;  %v646_v28 = vstv %s1679_s13 }
  0xc6   :  { %v661_v4 = vadd.f32 %v660_v2, %v1344_v31  ;;  %v681_v58 = vmul.f32 %v1685_v40, %v1370_v56  ;;  %v683_v42 = vmul.f32 %v1536_v39, %v1376_v62  ;;  %v640_v51 = vmax.f32 %v632_v37, %v639_v25 }
  0xc7   :  { %v655_v5 = vmax.f32 %v654_v36, 0.0  ;;  %v668_v50 = vadd.f32 %v667_v30, %v666_v54  ;;  %v687_v11 = vmul.f32 %v1685_v40, %v1361_v48  ;;  %v688_v18 = vmul.f32 %v1536_v39, %v1370_v56 }
  0xc8   :  { %v662_v41 = vmax.f32 %v661_v4, 0.0  ;;  %v682_v21 = vadd.f32 %v681_v58, %v680_v57  ;;  %v690_v22 = vmul.f32 %v1543_v44, %v1376_v62  ;;  %v613_v52 = vadd.f32 %v612_v3, %v582_v43  ;;  %v1863_v57 = vld [vmem:[#allocation18_spill] sm:$0xff] }
  0xc9   :  { %v617_v53 = vadd.f32 %v616_v14, %v586_v49  ;;  %v669_v12 = vadd.f32 %v668_v50, %v1344_v31  ;;  %v695_v61 = vmul.f32 %v1536_v39, %v1361_v48  ;;  %v673_v19 = vstv %s1701_s14 }
  0xca   :  { %v684_v20 = vadd.f32 %v683_v42, %v682_v21  ;;  %v689_v23 = vadd.f32 %v688_v18, %v687_v11  ;;  %v696_v46 = vmul.f32 %v1543_v44, %v1370_v56  ;;  %v643_v26 = vmul.f32 %v642_v15, %v640_v51  ;;  %v1866_v11 = vld [vmem:[#allocation21_spill] sm:$0xff] }
  0xcb   :  { %v663_v10 = vmax.f32 %v655_v5, %v662_v41  ;;  %v670_v59 = vmax.f32 %v669_v12, 0.0  ;;  %v698_v0 = vmul.f32 %v1556_v9, %v1376_v62  ;;  %v711_v48 = vmul.f32 %v1681_v13, %v1406_v45 }
  0xcc   :  { %v685_v31 = vadd.f32 %v684_v20, %v1389_v32  ;;  %v691_v24 = vadd.f32 %v690_v22, %v689_v23  ;;  %v697_v17 = vadd.f32 %v696_v46, %v695_v61  ;;  %v647_v7 = vmul.f32 %v646_v28, %v640_v51  ;;  %v1865_v51 = vld [vmem:[#allocation20_spill] sm:$0xff] }
  0xcd   :  { %v712_v56 = vmul.f32 %v1685_v40, %v1418_v27  ;;  %v714_v55 = vmul.f32 %v1536_v39, %v1421_v6  ;;  %v718_v62 = vmul.f32 %v1685_v40, %v1406_v45  ;;  %v719_v34 = vmul.f32 %v1536_v39, %v1418_v27 }
  0xce   :  { %v686_v60 = vmax.f32 %v685_v31, 0.0  ;;  %v692_v8 = vadd.f32 %v691_v24, %v1389_v32  ;;  %v699_v63 = vadd.f32 %v698_v0, %v697_v17  ;;  %v671_v33 = vmax.f32 %v663_v10, %v670_v59 }
  0xcf   :  { %v677_v47 = vstv %s1717_s15  ;;  %v713_v43 = vadd.f32 %v712_v56, %v711_v48  ;;  %v721_v16 = vmul.f32 %v1543_v44, %v1421_v6  ;;  %v720_v49 = vadd.f32 %v719_v34, %v718_v62  ;;  %v1869_v34 = vld [vmem:[#allocation24_spill] sm:$0xff] }
  0xd0   :  { %v693_v29 = vmax.f32 %v692_v8, 0.0  ;;  %v700_v1 = vadd.f32 %v699_v63, %v1389_v32  ;;  %v726_v37 = vmul.f32 %v1536_v39, %v1406_v45  ;;  %v644_v25 = vadd.f32 %v643_v26, %v613_v52 }
  0xd1   :  { %v648_v38 = vadd.f32 %v647_v7, %v617_v53  ;;  %v715_v15 = vadd.f32 %v714_v55, %v713_v43  ;;  %v727_v36 = vmul.f32 %v1543_v44, %v1418_v27  ;;  %v722_v3 = vadd.f32 %v721_v16, %v720_v49  ;;  %v1864_v27 = vld [vmem:[#allocation19_spill] sm:$0xff]  ;;  %v1867_v7 = vld [vmem:[#allocation22_spill] sm:$0xff]  ;;  %v1870_v43 = vld [vmem:[#allocation25_spill] sm:$0xff] }
  0xd2   :  { %v694_v2 = vmax.f32 %v686_v60, %v693_v29  ;;  %v701_v30 = vmax.f32 %v700_v1, 0.0  ;;  %v729_v14 = vmul.f32 %v1556_v9, %v1421_v6  ;;  %v674_v32 = vmul.f32 %v673_v19, %v671_v33  ;;  %v1868_v55 = vld [vmem:[#allocation23_spill] sm:$0xff] }
  0xd3   :  { %v704_v54 = vstv %s1733_s16  ;;  %v716_v28 = vadd.f32 %v715_v15, %v1863_v57  ;;  %v728_v45 = vadd.f32 %v727_v36, %v726_v37  ;;  %v678_v4 = vmul.f32 %v677_v47, %v671_v33 }
  0xd4   :  { %v723_v58 = vadd.f32 %v722_v3, %v1863_v57  ;;  %v742_v42 = vmul.f32 %v1681_v13, %v1864_v27  ;;  %v743_v5 = vmul.f32 %v1685_v40, %v1865_v51  ;;  %v745_v41 = vmul.f32 %v1536_v39, %v1866_v11 }
  0xd5   :  { %v717_v6 = vmax.f32 %v716_v28, 0.0  ;;  %v730_v50 = vadd.f32 %v729_v14, %v728_v45  ;;  %v749_v21 = vmul.f32 %v1685_v40, %v1864_v27  ;;  %v702_v18 = vmax.f32 %v694_v2, %v701_v30 }
  0xd6   :  { %v708_v22 = vstv %s1745_s17  ;;  %v724_v52 = vmax.f32 %v723_v58, 0.0  ;;  %v744_v53 = vadd.f32 %v743_v5, %v742_v42  ;;  %v750_v61 = vmul.f32 %v1536_v39, %v1865_v51 }
  0xd7   :  { %v731_v12 = vadd.f32 %v730_v50, %v1863_v57  ;;  %v752_v19 = vmul.f32 %v1543_v44, %v1866_v11  ;;  %v757_v20 = vmul.f32 %v1536_v39, %v1864_v27  ;;  %v675_v23 = vadd.f32 %v674_v32, %v644_v25 }
  0xd8   :  { %v679_v46 = vadd.f32 %v678_v4, %v648_v38  ;;  %v725_v26 = vmax.f32 %v717_v6, %v724_v52  ;;  %v746_v10 = vadd.f32 %v745_v41, %v744_v53  ;;  %v751_v0 = vadd.f32 %v750_v61, %v749_v21 }
  0xd9   :  { %v732_v59 = vmax.f32 %v731_v12, 0.0  ;;  %v758_v31 = vmul.f32 %v1543_v44, %v1865_v51  ;;  %v760_v24 = vmul.f32 %v1556_v9, %v1866_v11  ;;  %v705_v17 = vmul.f32 %v704_v54, %v702_v18 }
  0xda   :  { %v735_v48 = vstv %s1759_s18  ;;  %v747_v56 = vadd.f32 %v746_v10, %v1867_v7  ;;  %v773_v62 = vmul.f32 %v1681_v13, %v1868_v55  ;;  %v709_v60 = vmul.f32 %v708_v22, %v702_v18 }
  0xdb   :  { %v753_v8 = vadd.f32 %v752_v19, %v751_v0  ;;  %v759_v63 = vadd.f32 %v758_v31, %v757_v20  ;;  %v774_v33 = vmul.f32 %v1685_v40, %v1869_v34  ;;  %v739_v47 = vstv %s1764_s0 }
  0xdc   :  { %v776_v16 = vmul.f32 %v1536_v39, %v1870_v43  ;;  %v780_v29 = vmul.f32 %v1685_v40, %v1868_v55  ;;  %v781_v13 = vmul.f32 %v1536_v39, %v1869_v34  ;;  %v733_v1 = vmax.f32 %v725_v26, %v732_v59 }
  0xdd   :  { %v748_v49 = vmax.f32 %v747_v56, 0.0  ;;  %v754_v37 = vadd.f32 %v753_v8, %v1867_v7  ;;  %v761_v25 = vadd.f32 %v760_v24, %v759_v63  ;;  %v775_v38 = vadd.f32 %v774_v33, %v773_v62 }
  0xde   :  { %v782_v15 = vadd.f32 %v781_v13, %v780_v29  ;;  %v783_v36 = vmul.f32 %v1543_v44, %v1870_v43  ;;  %v788_v2 = vmul.f32 %v1536_v39, %v1868_v55  ;;  %v706_v30 = vadd.f32 %v705_v17, %v675_v23 }
  0xdf   :  { %v710_v3 = vadd.f32 %v709_v60, %v679_v46  ;;  %v755_v14 = vmax.f32 %v754_v37, 0.0  ;;  %v762_v40 = vadd.f32 %v761_v25, %v1867_v7  ;;  %v777_v32 = vadd.f32 %v776_v16, %v775_v38 }
  0xe0   :  { %v784_v54 = vadd.f32 %v783_v36, %v782_v15  ;;  %v789_v57 = vmul.f32 %v1543_v44, %v1869_v34  ;;  %v791_v28 = vmul.f32 %v1556_v9, %v1870_v43  ;;  %v736_v45 = vmul.f32 %v735_v48, %v733_v1 }
  0xe1   :  { %v740_v4 = vmul.f32 %v739_v47, %v733_v1  ;;  %v756_v58 = vmax.f32 %v748_v49, %v755_v14  ;;  %v763_v27 = vmax.f32 %v762_v40, 0.0  ;;  %v778_v39 = vadd.f32 %v777_v32, %v1526_v35 }
  0xe2   :  { %v785_v42 = vadd.f32 %v784_v54, %v1526_v35  ;;  %v790_v51 = vadd.f32 %v789_v57, %v788_v2  ;;  %v766_v6 = vstv %s1790_s1  ;;  %v770_v50 = vstv %s1792_s3 }
  0xe3   :  { %v764_v5 = vmax.f32 %v756_v58, %v763_v27  ;;  %v779_v11 = vmax.f32 %v778_v39, 0.0  ;;  %v737_v21 = vadd.f32 %v736_v45, %v706_v30  ;;  %v741_v18 = vadd.f32 %v740_v4, %v710_v3 }
  0xe4   :  { %v786_v41 = vmax.f32 %v785_v42, 0.0  ;;  %v792_v44 = vadd.f32 %v791_v28, %v790_v51  ;;  %v797_v61 = vstv %s903_s19  ;;  %v801_v19 = vstv %s904_s20 }
  0xe5   :  { %v767_v9 = vmul.f32 %v766_v6, %v764_v5  ;;  %v771_v22 = vmul.f32 %v770_v50, %v764_v5 }
  0xe6   :  { %v787_v52 = vmax.f32 %v779_v11, %v786_v41  ;;  %v793_v53 = vadd.f32 %v792_v44, %v1526_v35 }
  0xe7   :  { %v768_v20 = vadd.f32 %v767_v9, %v737_v21  ;;  %v772_v23 = vadd.f32 %v771_v22, %v741_v18 }
  0xe8   :  { %v794_v12 = vmax.f32 %v793_v53, 0.0 }
  0xea   :  { %v795_v46 = vmax.f32 %v787_v52, %v794_v12 }
  0xec   :  { %v798_v26 = vmul.f32 %v797_v61, %v795_v46  ;;  %v802_v10 = vmul.f32 %v801_v19, %v795_v46 }
  0xee   :  { %v799_v59 = vadd.f32 %v798_v26, %v768_v20  ;;  %v803_v0 = vadd.f32 %v802_v10, %v772_v23 }
  0xf0   :  { %804 = vst [vmem:[#allocation12] sm:$0xff] %v799_v59  ;;  %806 = vst [vmem:[#allocation12 + $0x8] sm:$0xff] %v803_v0 }
  0xf1   :  { %996 = shalt.err (!%p993_p4)
}
  0xf2   :  { %s997_s25 = scalar_lea.hbm %s1838_s5, 256 }
  0xf3   :  { %p998_p5 = scmp.ne.s32.totalorder %s1838_s5, %s997_s25  ;;  %p1001_p6 = scmp.lt.u32.totalorder %s997_s25, %s1838_s5 }
  0xf5   :  { %p1003_p7 = pnand %p1001_p6, %p998_p5 }
  0xf7   :  { %1006 = shalt.err (!%p1003_p7)
}
  0xf8   :  { %818 = dma.vmem_to_hbm [thread:$0]  %s813_s22, 256, %s1838_s5, [#allocation4], %s1019_s7, %s1019_s7, %s1020_s8  }
  0xf9   :  { %1015 = dma.done.wait [#allocation4], 256  }
  0xfa   :  { %1016 = vsyncadd [#allocation4], 4294967040 }
  0xfb   :  { %822 = vsyncpa [#allocation3], 1 }
  0xfc   :  { %823 = vsyncpa [#allocation4], 1 }
  0xfd   :  { %824 = vsyncpa [#allocation5], 1 }
  0xfe   :  { %825 = vsyncpa [#allocation8], 1 }
  0xff   :  { %826 = vsyncpa [#allocation11], 1 }

</bundles_post_ra>
